<compile_context>
chip_gen: v7x
topology: tpu7x:2x2x1
jax: 0.10.0
libtpu: 0.0.40
codegen_flags: <defaults>
</compile_context>

<pallas_src>
import functools

import jax
import jax.numpy as jnp
from jax.experimental import pallas as pl
from jax.experimental.pallas import tpu as pltpu

_LANE = 128
_VMEM_LIMIT = 64 * 1024 * 1024
_TAIL_BUDGET = 40 * 1024 * 1024


def _round_up(x, m):
    return ((x + m - 1) // m) * m


# ----------------------------------------------------------------------------
# Pallas kernel bodies
# ----------------------------------------------------------------------------
def _mm_bias_relu_kernel(x_ref, w_ref, b_ref, o_ref):
    # out = relu(x @ W_eff + b_eff)     (bf16 operands, f32 accumulation)
    acc = jnp.dot(x_ref[...], w_ref[...], preferred_element_type=jnp.float32)
    o_ref[...] = jnp.maximum(acc + b_ref[...], 0.0).astype(o_ref.dtype)


def _tail_proj_kernel(p_ref, w2_ref, b2_ref, xs_ref, w3_ref, ws_ref, b3_ref, o_ref):
    # out2 = relu(patches @ W2 + b2)      (stays in VMEM/vregs, never to HBM)
    a2 = jnp.dot(p_ref[...], w2_ref[...], preferred_element_type=jnp.float32)
    out2 = jnp.maximum(a2 + b2_ref[...], 0.0).astype(jnp.bfloat16)
    # out3 = relu(out2 @ W3 + x_s @ Ws + (b3 + bs))   (projection shortcut fused)
    a3 = jnp.dot(out2, w3_ref[...], preferred_element_type=jnp.float32)
    a3 = a3 + jnp.dot(xs_ref[...], ws_ref[...], preferred_element_type=jnp.float32)
    o_ref[...] = jnp.maximum(a3 + b3_ref[...], 0.0).astype(o_ref.dtype)


def _tail_id_kernel(p_ref, w2_ref, b2_ref, xs_ref, w3_ref, b3_ref, o_ref):
    # Identity shortcut: direct residual add (no eye matmul, no extra weights).
    a2 = jnp.dot(p_ref[...], w2_ref[...], preferred_element_type=jnp.float32)
    out2 = jnp.maximum(a2 + b2_ref[...], 0.0).astype(jnp.bfloat16)
    a3 = jnp.dot(out2, w3_ref[...], preferred_element_type=jnp.float32)
    a3 = a3 + b3_ref[...] + xs_ref[...].astype(jnp.float32)
    o_ref[...] = jnp.maximum(a3, 0.0).astype(o_ref.dtype)


# ----------------------------------------------------------------------------
# Kernel wrappers
# ----------------------------------------------------------------------------
def fused_matmul_bias_relu(x, w, b, out_dtype=jnp.bfloat16):
    """relu(x @ w + b).  K and Cout must be multiples of 128."""
    M, K = x.shape
    Kw, C = w.shape
    assert K == Kw and K % _LANE == 0 and C % _LANE == 0, (K, Kw, C)

    # Large, aligned M tiles (128-512); pad the ragged tail once.
    tm = min(512, _round_up(M, _LANE))
    Mp = _round_up(M, tm)
    if Mp != M:
        x = jnp.pad(x, ((0, Mp - M), (0, 0)))
    tn = 256 if C % 256 == 0 else _LANE
    grid = (Mp // tm, C // tn)

    bytes_accessed = (x.size * x.dtype.itemsize
                      + w.size * w.dtype.itemsize
                      + b.size * b.dtype.itemsize
                      + Mp * C * jnp.dtype(out_dtype).itemsize)

    out = pl.pallas_call(
        _mm_bias_relu_kernel,
        out_shape=jax.ShapeDtypeStruct((Mp, C), out_dtype),
        grid=grid,
        in_specs=[
            pl.BlockSpec((tm, K), lambda i, j: (i, 0)),
            pl.BlockSpec((K, tn), lambda i, j: (0, j)),
            pl.BlockSpec((1, tn), lambda i, j: (0, j)),
        ],
        out_specs=pl.BlockSpec((tm, tn), lambda i, j: (i, j)),
        compiler_params=pltpu.CompilerParams(
            dimension_semantics=("parallel", "parallel"),
            vmem_limit_bytes=_VMEM_LIMIT,
        ),
        cost_estimate=pl.CostEstimate(
            flops=2 * Mp * K * C,
            transcendentals=0,
            bytes_accessed=int(bytes_accessed),
        ),
    )(x, w, b)
    return out[:M] if Mp != M else out


def fused_tail(patches, w2, b2, x_res, w3, b3, ws=None, out_dtype=jnp.float32):
    """Fused: relu(bn2(conv2)) -> bn3(conv3) + shortcut -> relu, one pallas_call.

    patches : (M, 9*Cmid) bf16 im2col rows
    w2      : (9*Cmid, Cmid) bf16, b2 : (1, Cmid) f32        (BN2 folded)
    w3      : (Cmid, Cout)  bf16, b3 : (1, Cout) f32         (BN3 [+ BNs] folded)
    x_res   : (M, Cres) bf16 shortcut input (strided x for projection, x for identity)
    ws      : (Cres, Cout) bf16 projection shortcut weight, or None for identity.
    """
    M, K2 = patches.shape
    Cmid = w2.shape[1]
    Cout = w3.shape[1]
    Cres = x_res.shape[1]
    assert K2 % _LANE == 0 and Cmid % _LANE == 0
    assert Cout % _LANE == 0 and Cres % _LANE == 0

    # Pick the largest M tile whose fully-resident weights + double-buffered
    # streamed tiles fit comfortably in scoped VMEM.
    w_bytes = (K2 * Cmid + Cmid * Cout + (Cres * Cout if ws is not None else 0)) * 2
    tm = 128
    for cand in (512, 256, 128):
        io_bytes = 2 * cand * (K2 * 2 + Cres * 2 + Cout * 4)
        if 2 * w_bytes + io_bytes <= _TAIL_BUDGET:
            tm = cand
            break
    tm = min(tm, _round_up(M, _LANE))

    Mp = _round_up(M, tm)
    if Mp != M:
        patches = jnp.pad(patches, ((0, Mp - M), (0, 0)))
        x_res = jnp.pad(x_res, ((0, Mp - M), (0, 0)))
    grid = (Mp // tm,)

    in_specs = [
        pl.BlockSpec((tm, K2), lambda i: (i, 0)),
        pl.BlockSpec((K2, Cmid), lambda i: (0, 0)),
        pl.BlockSpec((1, Cmid), lambda i: (0, 0)),
        pl.BlockSpec((tm, Cres), lambda i: (i, 0)),
        pl.BlockSpec((Cmid, Cout), lambda i: (0, 0)),
    ]
    args = [patches, w2, b2, x_res, w3]
    flops = 2 * Mp * K2 * Cmid + 2 * Mp * Cmid * Cout
    if ws is not None:
        in_specs.append(pl.BlockSpec((Cres, Cout), lambda i: (0, 0)))
        args.append(ws)
        flops += 2 * Mp * Cres * Cout
        kernel = _tail_proj_kernel
    else:
        kernel = _tail_id_kernel
    in_specs.append(pl.BlockSpec((1, Cout), lambda i: (0, 0)))
    args.append(b3)

    bytes_accessed = sum(int(a.size) * a.dtype.itemsize for a in args) \
        + Mp * Cout * jnp.dtype(out_dtype).itemsize

    out = pl.pallas_call(
        kernel,
        out_shape=jax.ShapeDtypeStruct((Mp, Cout), out_dtype),
        grid=grid,
        in_specs=in_specs,
        out_specs=pl.BlockSpec((tm, Cout), lambda i: (i, 0)),
        compiler_params=pltpu.CompilerParams(
            dimension_semantics=("parallel",),
            vmem_limit_bytes=_VMEM_LIMIT,
        ),
        cost_estimate=pl.CostEstimate(
            flops=int(flops),
            transcendentals=0,
            bytes_accessed=int(bytes_accessed),
        ),
    )(*args)
    return out[:M] if Mp != M else out


# ----------------------------------------------------------------------------
# Glue: BN folding (with lane padding), im2col, channel padding
# ----------------------------------------------------------------------------
def fold_bn(w_oihw, gamma, beta, mean, var, cin_p, cout_p, eps=1e-5):
    """PyTorch conv weight (Cout,Cin,kh,kw) + eval-mode BN ->
       bf16 (kh*kw*cin_p, cout_p) weight, f32 (1, cout_p) bias.
       Padding is per-tap so the K ordering matches padded im2col patches."""
    w = w_oihw.astype(jnp.float32)
    scale = gamma.astype(jnp.float32) / jnp.sqrt(var.astype(jnp.float32) + eps)
    w_eff = w * scale[:, None, None, None]                    # fold BN before bf16 cast
    b_eff = beta.astype(jnp.float32) - mean.astype(jnp.float32) * scale
    cout, cin, kh, kw = w.shape
    w_hwio = jnp.transpose(w_eff, (2, 3, 1, 0))               # (kh, kw, cin, cout)
    w_hwio = jnp.pad(w_hwio, ((0, 0), (0, 0), (0, cin_p - cin), (0, cout_p - cout)))
    w_mat = w_hwio.reshape(kh * kw * cin_p, cout_p).astype(jnp.bfloat16)
    b_vec = jnp.pad(b_eff, (0, cout_p - cout)).reshape(1, cout_p)
    return w_mat, b_vec


def extract_patches_3x3(x_nhwc, stride):
    """x_nhwc (N,H,W,C) -> patches (N*Ho*Wo, 9*C), pad=1, K order (kh*3+kw)*C + c."""
    N, H, W, C = x_nhwc.shape
    Ho = (H - 1) // stride + 1
    Wo = (W - 1) // stride + 1
    xp = jnp.pad(x_nhwc, ((0, 0), (1, 1), (1, 1), (0, 0)))
    slabs = []
    for kh in range(3):
        for kw in range(3):
            sl = xp[:, kh:kh + (Ho - 1) * stride + 1:stride,
                       kw:kw + (Wo - 1) * stride + 1:stride, :]
            slabs.append(sl)
    patches = jnp.concatenate(slabs, axis=-1).reshape(N * Ho * Wo, 9 * C)
    return patches, (N, Ho, Wo)


def _pad_channels(x_nhwc, c_pad):
    c = x_nhwc.shape[-1]
    if c_pad != c:
        x_nhwc = jnp.pad(x_nhwc, ((0, 0), (0, 0), (0, 0), (0, c_pad - c)))
    return x_nhwc


# ----------------------------------------------------------------------------
# Bottleneck forward
# ----------------------------------------------------------------------------
def bottleneck_forward_nhwc(x_nhwc, params, stride):
    N, H, W, Cin = x_nhwc.shape
    planes = params["conv1_w"].shape[0]
    out_planes = params["conv3_w"].shape[0]          # expansion * planes

    cin_p = _round_up(Cin, _LANE)
    pln_p = _round_up(planes, _LANE)
    out_p = _round_up(out_planes, _LANE)

    # bf16 activations, lane-padded channels (zero pad -> exact zeros downstream).
    x_p = _pad_channels(x_nhwc.astype(jnp.float32), cin_p).astype(jnp.bfloat16)

    # --- conv1 (1x1) + bn1 + relu  (kernel 1) --------------------------------
    w1, b1 = fold_bn(params["conv1_w"], params["bn1_g"], params["bn1_b"],
                     params["bn1_m"], params["bn1_v"], cin_p, pln_p)
    out1 = fused_matmul_bias_relu(x_p.reshape(N * H * W, cin_p), w1, b1)
    out1 = out1.reshape(N, H, W, pln_p)

    # --- conv2 + bn2 + relu -> conv3 + bn3 -> +shortcut -> relu  (kernel 2) --
    w2, b2 = fold_bn(params["conv2_w"], params["bn2_g"], params["bn2_b"],
                     params["bn2_m"], params["bn2_v"], pln_p, pln_p)
    patches, (_, Ho, Wo) = extract_patches_3x3(out1, stride)     # bf16 (M, 9*pln_p)
    M = N * Ho * Wo

    w3, b3 = fold_bn(params["conv3_w"], params["bn3_g"], params["bn3_b"],
                     params["bn3_m"], params["bn3_v"], pln_p, out_p)

    if stride != 1 or Cin != out_planes:
        # Projection shortcut: extra matmul inside the same kernel epilogue.
        ws, bs = fold_bn(params["sc_w"], params["bns_g"], params["bns_b"],
                         params["bns_m"], params["bns_v"], cin_p, out_p)
        x_s = x_p[:, ::stride, ::stride, :].reshape(M, cin_p)
        out3 = fused_tail(patches, w2, b2, x_s, w3, b3 + bs, ws=ws,
                          out_dtype=jnp.float32)
    else:
        # Identity shortcut: direct residual add in the kernel.
        x_s = x_p.reshape(M, cin_p)                              # cin_p == out_p here
        out3 = fused_tail(patches, w2, b2, x_s, w3, b3, ws=None,
                          out_dtype=jnp.float32)

    return out3.reshape(N, Ho, Wo, out_p)[..., :out_planes]


def bottleneck_forward(x_nchw, params, stride):
    # TODO(synk): in a full network keep NHWC end-to-end; the NCHW<->NHWC
    # transposes here exist only to match the PyTorch public layout.
    x = jnp.transpose(x_nchw, (0, 2, 3, 1))
    out = bottleneck_forward_nhwc(x, params, stride)
    return jnp.transpose(out, (0, 3, 1, 2))


# ----------------------------------------------------------------------------
# Deterministic parameter init + pure-JAX reference for verification
# ----------------------------------------------------------------------------
def init_params(key, in_planes, planes, expansion=4):
    out_planes = expansion * planes
    ks = jax.random.split(key, 20)
    p = {
        "conv1_w": 0.1 * jax.random.normal(ks[0], (planes, in_planes, 1, 1), jnp.float32),
        "bn1_g": 1.0 + 0.1 * jax.random.normal(ks[1], (planes,), jnp.float32),
        "bn1_b": 0.1 * jax.random.normal(ks[2], (planes,), jnp.float32),
        "bn1_m": 0.1 * jax.random.normal(ks[3], (planes,), jnp.float32),
        "bn1_v": 0.5 + jax.random.uniform(ks[4], (planes,), jnp.float32),
        "conv2_w": 0.1 * jax.random.normal(ks[5], (planes, planes, 3, 3), jnp.float32),
        "bn2_g": 1.0 + 0.1 * jax.random.normal(ks[6], (planes,), jnp.float32),
        "bn2_b": 0.1 * jax.random.normal(ks[7], (planes,), jnp.float32),
        "bn2_m": 0.1 * jax.random.normal(ks[8], (planes,), jnp.float32),
        "bn2_v": 0.5 + jax.random.uniform(ks[9], (planes,), jnp.float32),
        "conv3_w": 0.1 * jax.random.normal(ks[10], (out_planes, planes, 1, 1), jnp.float32),
        "bn3_g": 1.0 + 0.1 * jax.random.normal(ks[11], (out_planes,), jnp.float32),
        "bn3_b": 0.1 * jax.random.normal(ks[12], (out_planes,), jnp.float32),
        "bn3_m": 0.1 * jax.random.normal(ks[13], (out_planes,), jnp.float32),
        "bn3_v": 0.5 + jax.random.uniform(ks[14], (out_planes,), jnp.float32),
        "sc_w": 0.1 * jax.random.normal(ks[15], (out_planes, in_planes, 1, 1), jnp.float32),
        "bns_g": 1.0 + 0.1 * jax.random.normal(ks[16], (out_planes,), jnp.float32),
        "bns_b": 0.1 * jax.random.normal(ks[17], (out_planes,), jnp.float32),
        "bns_m": 0.1 * jax.random.normal(ks[18], (out_planes,), jnp.float32),
        "bns_v": 0.5 + jax.random.uniform(ks[19], (out_planes,), jnp.float32),
    }
    return p


def reference_forward(x_nchw, params, stride, eps=1e-5):
    def conv(x, w, s, pad):
        return jax.lax.conv_general_dilated(
            x, w, window_strides=(s, s), padding=pad,
            dimension_numbers=("NCHW", "OIHW", "NCHW"))

    def bn(x, g, b, m, v):
        return (x - m[None, :, None, None]) / jnp.sqrt(v[None, :, None, None] + eps) \
               * g[None, :, None, None] + b[None, :, None, None]

    out = jax.nn.relu(bn(conv(x_nchw, params["conv1_w"], 1, [(0, 0), (0, 0)]),
                         params["bn1_g"], params["bn1_b"], params["bn1_m"], params["bn1_v"]))
    out = jax.nn.relu(bn(conv(out, params["conv2_w"], stride, [(1, 1), (1, 1)]),
                         params["bn2_g"], params["bn2_b"], params["bn2_m"], params["bn2_v"]))
    out = bn(conv(out, params["conv3_w"], 1, [(0, 0), (0, 0)]),
             params["bn3_g"], params["bn3_b"], params["bn3_m"], params["bn3_v"])
    in_planes = x_nchw.shape[1]
    out_planes = params["conv3_w"].shape[0]
    if stride != 1 or in_planes != out_planes:
        sc = bn(conv(x_nchw, params["sc_w"], stride, [(0, 0), (0, 0)]),
                params["bns_g"], params["bns_b"], params["bns_m"], params["bns_v"])
    else:
        sc = x_nchw
    return jax.nn.relu(out + sc)


def _check(out, ref, tol=5e-2):
    # bf16 streamed operands -> compare with a relative-to-max tolerance.
    err = float(jnp.max(jnp.abs(out - ref)))
    scale = float(jnp.max(jnp.abs(ref))) + 1e-6
    assert err / scale < tol, (err, scale)


if __name__ == "__main__":
    key = jax.random.PRNGKey(0)
    k_x, k_p = jax.random.split(key)

    # Projection-shortcut case: stride=2, in_planes != expansion*planes.
    N, in_planes, H, W = 2, 4, 16, 16
    planes, stride = 8, 2
    expansion = 4

    x = jax.random.normal(k_x, (N, in_planes, H, W), jnp.float32)
    params = init_params(k_p, in_planes, planes)

    fwd = jax.jit(functools.partial(bottleneck_forward, stride=stride))
    out = jax.block_until_ready(fwd(x, params))
    ref = reference_forward(x, params, stride)
    assert out.shape == ref.shape == (N, expansion * planes, H // stride, W // stride), out.shape
    _check(out, ref)

    # Identity-shortcut case: stride=1, in_planes == expansion*planes.
    in_planes_id = expansion * planes
    params_id = init_params(k_p, in_planes_id, planes)
    x_id = jax.random.normal(k_x, (N, in_planes_id, H, W), jnp.float32)
    fwd_id = jax.jit(functools.partial(bottleneck_forward, stride=1))
    out_id = jax.block_until_ready(fwd_id(x_id, params_id))
    ref_id = reference_forward(x_id, params_id, 1)
    assert out_id.shape == ref_id.shape == (N, expansion * planes, H, W), out_id.shape
    _check(out_id, ref_id)

    print("KERNEL_OK")
</pallas_src>

<mosaic_0001>
module attributes {stable_mosaic.version = 11 : i64} {
  func.func @_mm_bias_relu_kernel(%arg0: i32, %arg1: i32, %arg2: memref<512x128xbf16, #tpu.memory_space<vmem>>, %arg3: memref<128x128xbf16, #tpu.memory_space<vmem>>, %arg4: memref<1x128xf32, #tpu.memory_space<vmem>>, %arg5: memref<512x128xbf16, #tpu.memory_space<vmem>>) attributes {dimension_semantics = [#tpu.dimension_semantics<parallel>, #tpu.dimension_semantics<parallel>], iteration_bounds = array<i64: 1, 1>, scalar_prefetch = 0 : i64, scratch_operands = 0 : i64, tpu.core_type = #tpu.core_type<tc>, window_params = [{transform_indices = @transform_0, window_bounds = array<i64: 512, 128>}, {transform_indices = @transform_1, window_bounds = array<i64: 128, 128>}, {transform_indices = @transform_2, window_bounds = array<i64: 1, 128>}, {transform_indices = @transform_3, window_bounds = array<i64: 512, 128>}]} {
    %c0 = arith.constant 0 : index
    %c0_0 = arith.constant 0 : index
    %0 = vector.load %arg2[%c0, %c0_0] : memref<512x128xbf16, #tpu.memory_space<vmem>>, vector<512x128xbf16>
    %c0_1 = arith.constant 0 : index
    %c0_2 = arith.constant 0 : index
    %1 = vector.load %arg3[%c0_1, %c0_2] : memref<128x128xbf16, #tpu.memory_space<vmem>>, vector<128x128xbf16>
    %cst = arith.constant dense<0.000000e+00> : vector<512x128xf32>
    %2 = tpu.matmul %0, %1, %cst {dimension_numbers = #tpu.dot_dimension_numbers<[1], [0], [0], [1], [0, 0, 1, 1], [], []>} : vector<512x128xbf16>, vector<128x128xbf16>, vector<512x128xf32> -> vector<512x128xf32>
    %c0_3 = arith.constant 0 : index
    %c0_4 = arith.constant 0 : index
    %3 = vector.load %arg4[%c0_3, %c0_4] : memref<1x128xf32, #tpu.memory_space<vmem>>, vector<1x128xf32>
    %4 = vector.broadcast %3 : vector<1x128xf32> to vector<512x128xf32>
    %5 = arith.addf %2, %4 : vector<512x128xf32>
    %cst_5 = arith.constant 0.000000e+00 : f32
    %6 = vector.broadcast %cst_5 : f32 to vector<512x128xf32>
    %7 = arith.maximumf %5, %6 : vector<512x128xf32>
    %8 = arith.truncf %7 : vector<512x128xf32> to vector<512x128xbf16>
    %c0_6 = arith.constant 0 : index
    %c0_7 = arith.constant 0 : index
    %9 = vector.load %arg5[%c0_6, %c0_7] : memref<512x128xbf16, #tpu.memory_space<vmem>>, vector<512x128xbf16>
    tpu.vector_store %arg5[%c0_6, %c0_7], %8 {strides = array<i32>} : memref<512x128xbf16, #tpu.memory_space<vmem>>, vector<512x128xbf16>,
    return
  }
  func.func @transform_0(%arg0: i32, %arg1: i32) -> (i32, i32) {
    %c0_i32 = arith.constant 0 : i32
    %c0_i32_0 = arith.constant 0 : i32
    return %arg0, %c0_i32 : i32, i32
  }
  func.func @transform_1(%arg0: i32, %arg1: i32) -> (i32, i32) {
    %c0_i32 = arith.constant 0 : i32
    %c0_i32_0 = arith.constant 0 : i32
    return %c0_i32, %arg1 : i32, i32
  }
  func.func @transform_2(%arg0: i32, %arg1: i32) -> (i32, i32) {
    %c0_i32 = arith.constant 0 : i32
    %c0_i32_0 = arith.constant 0 : i32
    return %c0_i32, %arg1 : i32, i32
  }
  func.func @transform_3(%arg0: i32, %arg1: i32) -> (i32, i32) {
    %c0_i32 = arith.constant 0 : i32
    return %arg0, %arg1 : i32, i32
  }
}

module attributes {stable_mosaic.version = 11 : i64} {
  func.func @_tail_proj_kernel(%arg0: i32, %arg1: memref<128x1152xbf16, #tpu.memory_space<vmem>>, %arg2: memref<1152x128xbf16, #tpu.memory_space<vmem>>, %arg3: memref<1x128xf32, #tpu.memory_space<vmem>>, %arg4: memref<128x128xbf16, #tpu.memory_space<vmem>>, %arg5: memref<128x128xbf16, #tpu.memory_space<vmem>>, %arg6: memref<128x128xbf16, #tpu.memory_space<vmem>>, %arg7: memref<1x128xf32, #tpu.memory_space<vmem>>, %arg8: memref<128x128xf32, #tpu.memory_space<vmem>>) attributes {dimension_semantics = [#tpu.dimension_semantics<parallel>], iteration_bounds = array<i64: 1>, scalar_prefetch = 0 : i64, scratch_operands = 0 : i64, tpu.core_type = #tpu.core_type<tc>, window_params = [{transform_indices = @transform_0, window_bounds = array<i64: 128, 1152>}, {pipeline_mode = #tpu.pipeline_mode<synchronous>, transform_indices = @transform_1, window_bounds = array<i64: 1152, 128>}, {pipeline_mode = #tpu.pipeline_mode<synchronous>, transform_indices = @transform_2, window_bounds = array<i64: 1, 128>}, {transform_indices = @transform_3, window_bounds = array<i64: 128, 128>}, {pipeline_mode = #tpu.pipeline_mode<synchronous>, transform_indices = @transform_4, window_bounds = array<i64: 128, 128>}, {pipeline_mode = #tpu.pipeline_mode<synchronous>, transform_indices = @transform_5, window_bounds = array<i64: 128, 128>}, {pipeline_mode = #tpu.pipeline_mode<synchronous>, transform_indices = @transform_6, window_bounds = array<i64: 1, 128>}, {transform_indices = @transform_7, window_bounds = array<i64: 128, 128>}]} {
    %c0 = arith.constant 0 : index
    %c0_0 = arith.constant 0 : index
    %0 = vector.load %arg1[%c0, %c0_0] : memref<128x1152xbf16, #tpu.memory_space<vmem>>, vector<128x1152xbf16>
    %c0_1 = arith.constant 0 : index
    %c0_2 = arith.constant 0 : index
    %1 = vector.load %arg2[%c0_1, %c0_2] : memref<1152x128xbf16, #tpu.memory_space<vmem>>, vector<1152x128xbf16>
    %cst = arith.constant dense<0.000000e+00> : vector<128x128xf32>
    %2 = tpu.matmul %0, %1, %cst {dimension_numbers = #tpu.dot_dimension_numbers<[1], [0], [0], [1], [0, 0, 1, 1], [], []>} : vector<128x1152xbf16>, vector<1152x128xbf16>, vector<128x128xf32> -> vector<128x128xf32>
    %c0_3 = arith.constant 0 : index
    %c0_4 = arith.constant 0 : index
    %3 = vector.load %arg3[%c0_3, %c0_4] : memref<1x128xf32, #tpu.memory_space<vmem>>, vector<1x128xf32>
    %4 = vector.broadcast %3 : vector<1x128xf32> to vector<128x128xf32>
    %5 = arith.addf %2, %4 : vector<128x128xf32>
    %cst_5 = arith.constant 0.000000e+00 : f32
    %6 = vector.broadcast %cst_5 : f32 to vector<128x128xf32>
    %7 = arith.maximumf %5, %6 : vector<128x128xf32>
    %8 = arith.truncf %7 : vector<128x128xf32> to vector<128x128xbf16>
    %c0_6 = arith.constant 0 : index
    %c0_7 = arith.constant 0 : index
    %9 = vector.load %arg5[%c0_6, %c0_7] : memref<128x128xbf16, #tpu.memory_space<vmem>>, vector<128x128xbf16>
    %cst_8 = arith.constant dense<0.000000e+00> : vector<128x128xf32>
    %10 = tpu.matmul %8, %9, %cst_8 {dimension_numbers = #tpu.dot_dimension_numbers<[1], [0], [0], [1], [0, 0, 1, 1], [], []>} : vector<128x128xbf16>, vector<128x128xbf16>, vector<128x128xf32> -> vector<128x128xf32>
    %c0_9 = arith.constant 0 : index
    %c0_10 = arith.constant 0 : index
    %11 = vector.load %arg4[%c0_9, %c0_10] : memref<128x128xbf16, #tpu.memory_space<vmem>>, vector<128x128xbf16>
    %c0_11 = arith.constant 0 : index
    %c0_12 = arith.constant 0 : index
    %12 = vector.load %arg6[%c0_11, %c0_12] : memref<128x128xbf16, #tpu.memory_space<vmem>>, vector<128x128xbf16>
    %cst_13 = arith.constant dense<0.000000e+00> : vector<128x128xf32>
    %13 = tpu.matmul %11, %12, %cst_13 {dimension_numbers = #tpu.dot_dimension_numbers<[1], [0], [0], [1], [0, 0, 1, 1], [], []>} : vector<128x128xbf16>, vector<128x128xbf16>, vector<128x128xf32> -> vector<128x128xf32>
    %14 = arith.addf %10, %13 : vector<128x128xf32>
    %c0_14 = arith.constant 0 : index
    %c0_15 = arith.constant 0 : index
    %15 = vector.load %arg7[%c0_14, %c0_15] : memref<1x128xf32, #tpu.memory_space<vmem>>, vector<1x128xf32>
    %16 = vector.broadcast %15 : vector<1x128xf32> to vector<128x128xf32>
    %17 = arith.addf %14, %16 : vector<128x128xf32>
    %cst_16 = arith.constant 0.000000e+00 : f32
    %18 = vector.broadcast %cst_16 : f32 to vector<128x128xf32>
    %19 = arith.maximumf %17, %18 : vector<128x128xf32>
    %c0_17 = arith.constant 0 : index
    %c0_18 = arith.constant 0 : index
    %20 = vector.load %arg8[%c0_17, %c0_18] : memref<128x128xf32, #tpu.memory_space<vmem>>, vector<128x128xf32>
    tpu.vector_store %arg8[%c0_17, %c0_18], %19 {strides = array<i32>} : memref<128x128xf32, #tpu.memory_space<vmem>>, vector<128x128xf32>,
    return
  }
  func.func @transform_0(%arg0: i32) -> (i32, i32) {
    %c0_i32 = arith.constant 0 : i32
    %c0_i32_0 = arith.constant 0 : i32
    return %arg0, %c0_i32 : i32, i32
  }
  func.func @transform_1(%arg0: i32) -> (i32, i32) {
    %c0_i32 = arith.constant 0 : i32
    %c0_i32_0 = arith.constant 0 : i32
    %c0_i32_1 = arith.constant 0 : i32
    return %c0_i32, %c0_i32_0 : i32, i32
  }
  func.func @transform_2(%arg0: i32) -> (i32, i32) {
    %c0_i32 = arith.constant 0 : i32
    %c0_i32_0 = arith.constant 0 : i32
    %c0_i32_1 = arith.constant 0 : i32
    return %c0_i32, %c0_i32_0 : i32, i32
  }
  func.func @transform_3(%arg0: i32) -> (i32, i32) {
    %c0_i32 = arith.constant 0 : i32
    %c0_i32_0 = arith.constant 0 : i32
    return %arg0, %c0_i32 : i32, i32
  }
  func.func @transform_4(%arg0: i32) -> (i32, i32) {
    %c0_i32 = arith.constant 0 : i32
    %c0_i32_0 = arith.constant 0 : i32
    %c0_i32_1 = arith.constant 0 : i32
    return %c0_i32, %c0_i32_0 : i32, i32
  }
  func.func @transform_5(%arg0: i32) -> (i32, i32) {
    %c0_i32 = arith.constant 0 : i32
    %c0_i32_0 = arith.constant 0 : i32
    %c0_i32_1 = arith.constant 0 : i32
    return %c0_i32, %c0_i32_0 : i32, i32
  }
  func.func @transform_6(%arg0: i32) -> (i32, i32) {
    %c0_i32 = arith.constant 0 : i32
    %c0_i32_0 = arith.constant 0 : i32
    %c0_i32_1 = arith.constant 0 : i32
    return %c0_i32, %c0_i32_0 : i32, i32
  }
  func.func @transform_7(%arg0: i32) -> (i32, i32) {
    %c0_i32 = arith.constant 0 : i32
    %c0_i32_0 = arith.constant 0 : i32
    return %arg0, %c0_i32 : i32, i32
  }
}

</mosaic_0001>

<bundles_post_ra>
// kernel: bottleneck_forward.2
= control target key start
LH: loop header
LB: loop body
LE: loop exit
PB: predicated region body
PF: predicated region fallthrough
CT: control target
= control target key end

     0   :  { %8 = vsyncpa [#allocation3], 0  ;;  %s1865_s0 = inlined_call_operand.hbm [shape: bf16[512,128], index: 0, kind: input, shape index: {}]   ;;  %s1866_s1 = inlined_call_operand.hbm [shape: bf16[128,128], index: 1, kind: input, shape index: {}]   ;;  %s1867_s2 = inlined_call_operand.hbm [shape: f32[1,128], index: 2, kind: input, shape index: {}]   ;;  %s1868_s3 = inlined_call_operand.hbm [shape: bf16[512,128], index: 3, kind: output, shape index: {}]  }
   0x1   :  { %9 = vsyncpa [#allocation6], 0 }
   0x2   :  { %10 = vsyncpa [#allocation4], 0  ;;  %s1709_s12 = smov [#allocation5]   ;;  %s1710_s14 = smov [#allocation2]  }
   0x3   :  { %s28_s13 = sshll.u32 %s1709_s12, 4  ;;  %s16_s15 = sshll.u32 %s1710_s14, 4  ;;  %s29_s13 = int_to_ptr.vmem [resolvable:$true] %s28_s13  ;;  %s1735_s15 = int_to_ptr.vmem [resolvable:$true] %s16_s15 }
   0x4   :  { %s1615_s18 = scalar_lea.hbm %s1866_s1, 1024 }
   0x5   :  { %p1616_p0 = scmp.ne.s32.totalorder %s1866_s1, %s1615_s18  ;;  %p1619_p1 = scmp.lt.u32.totalorder %s1615_s18, %s1866_s1 }
   0x7   :  { %p1621_p2 = pnand %p1619_p1, %p1616_p0 }
   0x9   :  { %1624 = shalt.err (!%p1621_p2)
}
   0xa   :  { %s1625_s23 = scalar_lea.vmem %s29_s13, 1024  ;;  %p1630_p4 = scmp.lt.s32.totalorder %s29_s13, %s29_s13 }
   0xb   :  { %p1626_p3 = scmp.ne.s32.totalorder %s29_s13, %s1625_s23  ;;  %p1631_p5 = scmp.lt.s32.totalorder %s1625_s23, %s1625_s23 }
   0xd   :  { %p1632_p6 = por %p1631_p5, %p1630_p4 }
   0xf   :  { %p1633_p7 = pnand %p1632_p6, %p1626_p3 }
  0x11   :  { %1636 = shalt.err (!%p1633_p7)
}
  0x12   :  { %s1711_s24 = smov 64   ;;  %s1712_s25 = smov 4  }
  0x13   :  { %34 = dma.hbm_to_vmem [thread:$0]  %s1866_s1, 1024, %s29_s13, [#allocation6], %s1711_s24, %s1711_s24, %s1712_s25  }
  0x14   :  { %s1637_s30 = scalar_lea.hbm %s1865_s0, 4096 }
  0x15   :  { %p1638_p8 = scmp.ne.s32.totalorder %s1865_s0, %s1637_s30  ;;  %p1641_p9 = scmp.lt.u32.totalorder %s1637_s30, %s1865_s0 }
  0x17   :  { %p1643_p10 = pnand %p1641_p9, %p1638_p8 }
  0x19   :  { %1646 = shalt.err (!%p1643_p10)
}
  0x1a   :  { %s1647_s8 = scalar_lea.vmem %s1735_s15, 4096  ;;  %p1652_p12 = scmp.lt.s32.totalorder %s1735_s15, %s1735_s15 }
  0x1b   :  { %p1648_p11 = scmp.ne.s32.totalorder %s1735_s15, %s1647_s8  ;;  %p1653_p13 = scmp.lt.s32.totalorder %s1647_s8, %s1647_s8 }
  0x1d   :  { %p1654_p0 = por %p1653_p13, %p1652_p12 }
  0x1f   :  { %p1655_p1 = pnand %p1654_p0, %p1648_p11 }
  0x21   :  { %1658 = shalt.err (!%p1655_p1)
}
  0x22   :  { %22 = dma.hbm_to_vmem [thread:$0]  %s1865_s0, 4096, %s1735_s15, [#allocation3], %s1711_s24, %s1711_s24, %s1712_s25  }
  0x23   :  { %s1713_s10 = smov [#allocation7]   ;;  %s1659_s14 = scalar_lea.hbm %s1867_s2, 16 }
  0x24   :  { %s41_s11 = sshll.u32 %s1713_s10, 4  ;;  %p1660_p2 = scmp.ne.s32.totalorder %s1867_s2, %s1659_s14  ;;  %s42_s11 = int_to_ptr.vmem [resolvable:$true] %s41_s11 }
  0x25   :  { %p1663_p3 = scmp.lt.u32.totalorder %s1659_s14, %s1867_s2 }
  0x27   :  { %p1665_p4 = pnand %p1663_p3, %p1660_p2 }
  0x29   :  { %1668 = shalt.err (!%p1665_p4)
}
  0x2a   :  { %s1669_s20 = scalar_lea.vmem %s42_s11, 16  ;;  %s1673_s0 = scalar_lea.vmem %s42_s11, 32 }
  0x2b   :  { %p1670_p5 = scmp.ne.s32.totalorder %s42_s11, %s1669_s20  ;;  %p1674_p6 = scmp.lt.s32.totalorder %s42_s11, %s42_s11 }
  0x2c   :  { %p1675_p7 = scmp.lt.s32.totalorder %s1673_s0, %s1669_s20 }
  0x2e   :  { %p1676_p8 = por %p1675_p7, %p1674_p6 }
  0x30   :  { %p1677_p9 = pnand %p1676_p8, %p1670_p5 }
  0x32   :  { %1680 = shalt.err (!%p1677_p9)
}
  0x33   :  { %44 = dma.hbm_to_vmem [thread:$0]  %s1867_s2, 16, %s42_s11, [#allocation6]  }
  0x34   :  { %1703 = dma.done.wait [#allocation3], 4096  }
  0x35   :  { %1704 = vsyncadd [#allocation3], 4294963200 }
  0x36   :  { %1705 = dma.done.wait [#allocation6], 1040  }
  0x37   :  { %1706 = vsyncadd [#allocation6], 4294966256  ;;  %v1575_v0 = vld [vmem:[#allocation5] sm:$0xff]   ;;  %v1576_v1 = vld [vmem:[#allocation5 + $0x8] sm:$0xff]   ;;  %s1714_s2 = smov [#allocation8]  }
  0x38   :  { %1473 = vmatprep.subr.bf16.mxu0 %v1575_v0  ;;  %1553 = vmatprep.subr.bf16.mxu1 %v1575_v0  ;;  %v1577_v2 = vld [vmem:[#allocation5 + $0x10] sm:$0xff]   ;;  %v1578_v3 = vld [vmem:[#allocation5 + $0x18] sm:$0xff]   ;;  %v1583_v4 = vld [vmem:[#allocation2] sm:$0xff]   ;;  %s1060_s22 = sshll.u32 %s1714_s2, 4  ;;  %s1061_s22 = int_to_ptr.vmem [resolvable:$true] %s1060_s22 }
  0x39   :  { %1474 = vmatpush3.bf16.msra.mxu0 %v1575_v0  ;;  %1561 = vmatpush3.bf16.msra.mxu1 %v1575_v0  ;;  %v1584_v5 = vld [vmem:[#allocation2 + $0x80] sm:$0xff]   ;;  %v1580_v7 = vld [vmem:[#allocation5 + $0x28] sm:$0xff]   ;;  %v1581_v8 = vld [vmem:[#allocation5 + $0x30] sm:$0xff]   ;;  %s1681_s23 = scalar_lea.vmem %s1061_s22, 4096  ;;  %p1686_p11 = scmp.lt.s32.totalorder %s1061_s22, %s1061_s22 }
  0x3a   :  { %1475 = vmatprep.subr.bf16.mxu0 %v1576_v1  ;;  %1554 = vmatprep.subr.bf16.mxu1 %v1576_v1  ;;  %v1579_v6 = vld [vmem:[#allocation5 + $0x20] sm:$0xff]   ;;  %v1582_v9 = vld [vmem:[#allocation5 + $0x38] sm:$0xff]   ;;  %v1585_v10 = vld [vmem:[#allocation2 + $0x8] sm:$0xff]   ;;  %p1682_p10 = scmp.ne.s32.totalorder %s1061_s22, %s1681_s23  ;;  %p1687_p12 = scmp.lt.s32.totalorder %s1681_s23, %s1681_s23 }
  0x3b   :  { %1489 = vmatprep.mubr.bf16.mxu0 %v1583_v4  ;;  %1521 = vmatprep.mubr.bf16.mxu1 %v1584_v5  ;;  %v1586_v11 = vld [vmem:[#allocation2 + $0x88] sm:$0xff]   ;;  %v1587_v12 = vld [vmem:[#allocation2 + $0x10] sm:$0xff]   ;;  %v1589_v14 = vld [vmem:[#allocation2 + $0x18] sm:$0xff]  }
  0x3c   :  { %v1588_v13 = vld [vmem:[#allocation2 + $0x90] sm:$0xff]   ;;  %v1590_v15 = vld [vmem:[#allocation2 + $0x98] sm:$0xff]   ;;  %v1591_v16 = vld [vmem:[#allocation2 + $0x20] sm:$0xff]   ;;  %p1688_p13 = por %p1687_p12, %p1686_p11 }
  0x3d   :  { %1476 = vmatpush3.bf16.msra.mxu0 %v1576_v1  ;;  %1562 = vmatpush3.bf16.msra.mxu1 %v1576_v1  ;;  %v1592_v17 = vld [vmem:[#allocation2 + $0xa0] sm:$0xff]   ;;  %v1593_v18 = vld [vmem:[#allocation2 + $0x28] sm:$0xff]   ;;  %v1595_v20 = vld [vmem:[#allocation2 + $0x30] sm:$0xff]  }
  0x3e   :  { %1477 = vmatprep.subr.bf16.mxu0 %v1577_v2  ;;  %1555 = vmatprep.subr.bf16.mxu1 %v1577_v2  ;;  %v1594_v19 = vld [vmem:[#allocation2 + $0xa8] sm:$0xff]   ;;  %v1596_v21 = vld [vmem:[#allocation2 + $0xb0] sm:$0xff]   ;;  %v1597_v22 = vld [vmem:[#allocation2 + $0x38] sm:$0xff]   ;;  %p1689_p0 = pnand %p1688_p13, %p1682_p10 }
  0x3f   :  { %v1598_v23 = vld [vmem:[#allocation2 + $0xb8] sm:$0xff]   ;;  %v1599_v24 = vld [vmem:[#allocation2 + $0x40] sm:$0xff]   ;;  %v1601_v26 = vld [vmem:[#allocation2 + $0x48] sm:$0xff]  }
  0x40   :  { %v1600_v25 = vld [vmem:[#allocation2 + $0xc0] sm:$0xff]   ;;  %v1602_v27 = vld [vmem:[#allocation2 + $0xc8] sm:$0xff]   ;;  %v1603_v28 = vld [vmem:[#allocation2 + $0x50] sm:$0xff]  }
  0x41   :  { %1478 = vmatpush3.bf16.msra.mxu0 %v1577_v2  ;;  %1563 = vmatpush3.bf16.msra.mxu1 %v1577_v2  ;;  %v1604_v29 = vld [vmem:[#allocation2 + $0xd0] sm:$0xff]   ;;  %v1605_v30 = vld [vmem:[#allocation2 + $0x58] sm:$0xff]   ;;  %v1607_v32 = vld [vmem:[#allocation2 + $0x60] sm:$0xff]  }
  0x42   :  { %1479 = vmatprep.subr.bf16.mxu0 %v1578_v3  ;;  %1556 = vmatprep.subr.bf16.mxu1 %v1578_v3  ;;  %v1606_v31 = vld [vmem:[#allocation2 + $0xd8] sm:$0xff]   ;;  %v1608_v33 = vld [vmem:[#allocation2 + $0xe0] sm:$0xff]   ;;  %v1609_v34 = vld [vmem:[#allocation2 + $0x68] sm:$0xff]  }
  0x43   :  { %v1610_v35 = vld [vmem:[#allocation2 + $0xe8] sm:$0xff]   ;;  %v1611_v36 = vld [vmem:[#allocation2 + $0x70] sm:$0xff]   ;;  %v1613_v38 = vld [vmem:[#allocation2 + $0x78] sm:$0xff]  }
  0x44   :  { %v1612_v37 = vld [vmem:[#allocation2 + $0xf0] sm:$0xff]   ;;  %v1614_v39 = vld [vmem:[#allocation2 + $0xf8] sm:$0xff]   ;;  %v1784_v40 = vld [vmem:[#allocation7] ss:$0 sm:$0xff] }
  0x45   :  { %1480 = vmatpush3.bf16.msra.mxu0 %v1578_v3  ;;  %1564 = vmatpush3.bf16.msra.mxu1 %v1578_v3 }
  0x46   :  { %1481 = vmatprep.subr.bf16.mxu0 %v1579_v6  ;;  %1557 = vmatprep.subr.bf16.mxu1 %v1579_v6 }
  0x49   :  { %1482 = vmatpush3.bf16.msra.mxu0 %v1579_v6  ;;  %1565 = vmatpush3.bf16.msra.mxu1 %v1579_v6 }
  0x4a   :  { %1483 = vmatprep.subr.bf16.mxu0 %v1580_v7  ;;  %1558 = vmatprep.subr.bf16.mxu1 %v1580_v7 }
  0x4d   :  { %1484 = vmatpush3.bf16.msra.mxu0 %v1580_v7  ;;  %1566 = vmatpush3.bf16.msra.mxu1 %v1580_v7 }
  0x4e   :  { %1485 = vmatprep.subr.bf16.mxu0 %v1581_v8  ;;  %1559 = vmatprep.subr.bf16.mxu1 %v1581_v8 }
  0x51   :  { %1486 = vmatpush3.bf16.msra.mxu0 %v1581_v8  ;;  %1567 = vmatpush3.bf16.msra.mxu1 %v1581_v8 }
  0x52   :  { %1487 = vmatprep.subr.bf16.mxu0 %v1582_v9  ;;  %1560 = vmatprep.subr.bf16.mxu1 %v1582_v9 }
  0x55   :  { %1488 = vmatpush3.bf16.msra.mxu0 %v1582_v9  ;;  %1568 = vmatpush3.bf16.msra.mxu1 %v1582_v9 }
  0x58   :  { %1490 = vmatmul.mubr.bf16.vlgmr.msra.gmra.mrb[0].mxu0 %v1585_v10  ;;  %1522 = vmatmul.mubr.bf16.vlgmr.msra.gmra.mrb[0].mxu1 %v1586_v11 }
  0x59   :  { %1493 = vmatprep.mubr.bf16.mxu0 %v1587_v12  ;;  %1525 = vmatprep.mubr.bf16.mxu1 %v1588_v13 }
  0x60   :  { %1494 = vmatmul.mubr.bf16.gmra.mrb[4].mxu0 %v1589_v14  ;;  %1526 = vmatmul.mubr.bf16.gmra.mrb[4].mxu1 %v1590_v15 }
  0x61   :  { %1497 = vmatprep.mubr.bf16.mxu0 %v1591_v16  ;;  %1529 = vmatprep.mubr.bf16.mxu1 %v1592_v17 }
  0x68   :  { %1498 = vmatmul.mubr.bf16.gmra.mrb[8].mxu0 %v1593_v18  ;;  %1530 = vmatmul.mubr.bf16.gmra.mrb[8].mxu1 %v1594_v19 }
  0x69   :  { %1501 = vmatprep.mubr.bf16.mxu0 %v1595_v20  ;;  %1533 = vmatprep.mubr.bf16.mxu1 %v1596_v21 }
  0x70   :  { %1502 = vmatmul.mubr.bf16.gmra.mrb[12].mxu0 %v1597_v22  ;;  %1534 = vmatmul.mubr.bf16.gmra.mrb[12].mxu1 %v1598_v23 }
  0x71   :  { %1505 = vmatprep.mubr.bf16.mxu0 %v1599_v24  ;;  %1537 = vmatprep.mubr.bf16.mxu1 %v1600_v25 }
  0x78   :  { %1506 = vmatmul.mubr.bf16.gmra.mrb[16].mxu0 %v1601_v26  ;;  %1538 = vmatmul.mubr.bf16.gmra.mrb[16].mxu1 %v1602_v27 }
  0x79   :  { %1509 = vmatprep.mubr.bf16.mxu0 %v1603_v28  ;;  %1541 = vmatprep.mubr.bf16.mxu1 %v1604_v29 }
  0x80   :  { %1510 = vmatmul.mubr.bf16.gmra.mrb[20].mxu0 %v1605_v30  ;;  %1542 = vmatmul.mubr.bf16.gmra.mrb[20].mxu1 %v1606_v31 }
  0x81   :  { %1513 = vmatprep.mubr.bf16.mxu0 %v1607_v32  ;;  %1545 = vmatprep.mubr.bf16.mxu1 %v1608_v33 }
  0x88   :  { %1514 = vmatmul.mubr.bf16.gmra.mrb[24].mxu0 %v1609_v34  ;;  %1546 = vmatmul.mubr.bf16.gmra.mrb[24].mxu1 %v1610_v35 }
  0x89   :  { %1517 = vmatprep.mubr.bf16.mxu0 %v1611_v36  ;;  %1549 = vmatprep.mubr.bf16.mxu1 %v1612_v37 }
  0x90   :  { %1518 = vmatmul.mubr.bf16.gmra.mrb[28].mxu0 %v1613_v38  ;;  %1550 = vmatmul.mubr.bf16.gmra.mrb[28].mxu1 %v1614_v39 }
 0x12b   :  { %v1491_v41 = vpop.f32.mrb[0].mxu0  ;;  %v1523_v42 = vpop.f32.mrb[0].mxu1 }
 0x12c   :  { %v425_v43 = vadd.f32 %v1491_v41, %v1784_v40  ;;  %v553_v44 = vadd.f32 %v1523_v42, %v1784_v40  ;;  %v416_v45 = vpop.f32.mrb[1].mxu0  ;;  %v544_v46 = vpop.f32.mrb[1].mxu1 }
 0x12d   :  { %v417_v47 = vadd.f32 %v1784_v40, %v416_v45  ;;  %v545_v48 = vadd.f32 %v1784_v40, %v544_v46  ;;  %v1492_v49 = vpop.f32.mrb[2].mxu0  ;;  %v1524_v50 = vpop.f32.mrb[2].mxu1 }
 0x12e   :  { %v428_v51 = vadd.f32 %v1492_v49, %v1784_v40  ;;  %v556_v52 = vadd.f32 %v1524_v50, %v1784_v40  ;;  %v419_v53 = vpop.f32.mrb[3].mxu0  ;;  %v547_v54 = vpop.f32.mrb[3].mxu1  ;;  %v673_v57 = vmax.f32 %v425_v43, 0.0  ;;  %v705_v58 = vmax.f32 %v553_v44, 0.0 }
 0x12f   :  { %v420_v55 = vadd.f32 %v1784_v40, %v419_v53  ;;  %v548_v56 = vadd.f32 %v1784_v40, %v547_v54  ;;  %v671_v61 = vmax.f32 %v417_v47, 0.0  ;;  %v703_v62 = vmax.f32 %v545_v48, 0.0 }
 0x130   :  { %v674_v59 = vmax.f32 %v428_v51, 0.0  ;;  %v706_v60 = vmax.f32 %v556_v52, 0.0 }
 0x131   :  { %v672_v63 = vmax.f32 %v420_v55, 0.0  ;;  %v704_v0 = vmax.f32 %v548_v56, 0.0 }
 0x132   :  { %v1250_v1 = vpack.c.bf16 %v674_v59, %v673_v57  ;;  %v1330_v2 = vpack.c.bf16 %v706_v60, %v705_v58 }
 0x133   :  { %v1245_v3 = vpack.c.bf16 %v672_v63, %v671_v61  ;;  %v1325_v4 = vpack.c.bf16 %v704_v0, %v703_v62  ;;  %v1495_v5 = vpop.f32.mrb[4].mxu0  ;;  %v1527_v6 = vpop.f32.mrb[4].mxu1 }
 0x134   :  { %1402 = vst [vmem:[#allocation8 + $0x8] sm:$0xff] %v1250_v1   ;;  %1418 = vst [vmem:[#allocation8 + $0x88] sm:$0xff] %v1330_v2   ;;  %v441_v7 = vadd.f32 %v1495_v5, %v1784_v40  ;;  %v569_v8 = vadd.f32 %v1527_v6, %v1784_v40  ;;  %v432_v9 = vpop.f32.mrb[5].mxu0  ;;  %v560_v10 = vpop.f32.mrb[5].mxu1 }
 0x135   :  { %1246 = vst [vmem:[#allocation8] sm:$0xff] %v1245_v3   ;;  %1417 = vst [vmem:[#allocation8 + $0x80] sm:$0xff] %v1325_v4   ;;  %v433_v11 = vadd.f32 %v1784_v40, %v432_v9  ;;  %v561_v12 = vadd.f32 %v1784_v40, %v560_v10  ;;  %v1496_v13 = vpop.f32.mrb[6].mxu0  ;;  %v1528_v14 = vpop.f32.mrb[6].mxu1 }
 0x136   :  { %v444_v15 = vadd.f32 %v1496_v13, %v1784_v40  ;;  %v572_v16 = vadd.f32 %v1528_v14, %v1784_v40  ;;  %v435_v17 = vpop.f32.mrb[7].mxu0  ;;  %v563_v18 = vpop.f32.mrb[7].mxu1  ;;  %v677_v21 = vmax.f32 %v441_v7, 0.0  ;;  %v709_v22 = vmax.f32 %v569_v8, 0.0 }
 0x137   :  { %v436_v19 = vadd.f32 %v1784_v40, %v435_v17  ;;  %v564_v20 = vadd.f32 %v1784_v40, %v563_v18  ;;  %v675_v25 = vmax.f32 %v433_v11, 0.0  ;;  %v707_v26 = vmax.f32 %v561_v12, 0.0 }
 0x138   :  { %v678_v23 = vmax.f32 %v444_v15, 0.0  ;;  %v710_v24 = vmax.f32 %v572_v16, 0.0 }
 0x139   :  { %v676_v27 = vmax.f32 %v436_v19, 0.0  ;;  %v708_v28 = vmax.f32 %v564_v20, 0.0 }
 0x13a   :  { %v1260_v29 = vpack.c.bf16 %v678_v23, %v677_v21  ;;  %v1340_v30 = vpack.c.bf16 %v710_v24, %v709_v22 }
 0x13b   :  { %v1255_v31 = vpack.c.bf16 %v676_v27, %v675_v25  ;;  %v1335_v32 = vpack.c.bf16 %v708_v28, %v707_v26  ;;  %v1499_v33 = vpop.f32.mrb[8].mxu0  ;;  %v1531_v34 = vpop.f32.mrb[8].mxu1 }
 0x13c   :  { %1404 = vst [vmem:[#allocation8 + $0x18] sm:$0xff] %v1260_v29   ;;  %1420 = vst [vmem:[#allocation8 + $0x98] sm:$0xff] %v1340_v30   ;;  %v457_v35 = vadd.f32 %v1499_v33, %v1784_v40  ;;  %v585_v36 = vadd.f32 %v1531_v34, %v1784_v40  ;;  %v448_v37 = vpop.f32.mrb[9].mxu0  ;;  %v576_v38 = vpop.f32.mrb[9].mxu1 }
 0x13d   :  { %1403 = vst [vmem:[#allocation8 + $0x10] sm:$0xff] %v1255_v31   ;;  %1419 = vst [vmem:[#allocation8 + $0x90] sm:$0xff] %v1335_v32   ;;  %v449_v39 = vadd.f32 %v1784_v40, %v448_v37  ;;  %v577_v41 = vadd.f32 %v1784_v40, %v576_v38  ;;  %v1500_v42 = vpop.f32.mrb[10].mxu0  ;;  %v1532_v43 = vpop.f32.mrb[10].mxu1 }
 0x13e   :  { %v460_v44 = vadd.f32 %v1500_v42, %v1784_v40  ;;  %v588_v45 = vadd.f32 %v1532_v43, %v1784_v40  ;;  %v451_v46 = vpop.f32.mrb[11].mxu0  ;;  %v579_v47 = vpop.f32.mrb[11].mxu1  ;;  %v681_v50 = vmax.f32 %v457_v35, 0.0  ;;  %v713_v51 = vmax.f32 %v585_v36, 0.0 }
 0x13f   :  { %v452_v48 = vadd.f32 %v1784_v40, %v451_v46  ;;  %v580_v49 = vadd.f32 %v1784_v40, %v579_v47  ;;  %v679_v54 = vmax.f32 %v449_v39, 0.0  ;;  %v711_v55 = vmax.f32 %v577_v41, 0.0 }
 0x140   :  { %v682_v52 = vmax.f32 %v460_v44, 0.0  ;;  %v714_v53 = vmax.f32 %v588_v45, 0.0 }
 0x141   :  { %v680_v56 = vmax.f32 %v452_v48, 0.0  ;;  %v712_v57 = vmax.f32 %v580_v49, 0.0 }
 0x142   :  { %v1270_v58 = vpack.c.bf16 %v682_v52, %v681_v50  ;;  %v1350_v59 = vpack.c.bf16 %v714_v53, %v713_v51 }
 0x143   :  { %v1265_v60 = vpack.c.bf16 %v680_v56, %v679_v54  ;;  %v1345_v61 = vpack.c.bf16 %v712_v57, %v711_v55  ;;  %v1503_v62 = vpop.f32.mrb[12].mxu0  ;;  %v1535_v63 = vpop.f32.mrb[12].mxu1 }
 0x144   :  { %1406 = vst [vmem:[#allocation8 + $0x28] sm:$0xff] %v1270_v58   ;;  %1422 = vst [vmem:[#allocation8 + $0xa8] sm:$0xff] %v1350_v59   ;;  %v473_v0 = vadd.f32 %v1503_v62, %v1784_v40  ;;  %v601_v1 = vadd.f32 %v1535_v63, %v1784_v40  ;;  %v464_v2 = vpop.f32.mrb[13].mxu0  ;;  %v592_v3 = vpop.f32.mrb[13].mxu1 }
 0x145   :  { %1405 = vst [vmem:[#allocation8 + $0x20] sm:$0xff] %v1265_v60   ;;  %1421 = vst [vmem:[#allocation8 + $0xa0] sm:$0xff] %v1345_v61   ;;  %v465_v4 = vadd.f32 %v1784_v40, %v464_v2  ;;  %v593_v5 = vadd.f32 %v1784_v40, %v592_v3  ;;  %v1504_v6 = vpop.f32.mrb[14].mxu0  ;;  %v1536_v7 = vpop.f32.mrb[14].mxu1 }
 0x146   :  { %v476_v8 = vadd.f32 %v1504_v6, %v1784_v40  ;;  %v604_v9 = vadd.f32 %v1536_v7, %v1784_v40  ;;  %v467_v10 = vpop.f32.mrb[15].mxu0  ;;  %v595_v11 = vpop.f32.mrb[15].mxu1  ;;  %v685_v14 = vmax.f32 %v473_v0, 0.0  ;;  %v717_v15 = vmax.f32 %v601_v1, 0.0 }
 0x147   :  { %v468_v12 = vadd.f32 %v1784_v40, %v467_v10  ;;  %v596_v13 = vadd.f32 %v1784_v40, %v595_v11  ;;  %v683_v18 = vmax.f32 %v465_v4, 0.0  ;;  %v715_v19 = vmax.f32 %v593_v5, 0.0 }
 0x148   :  { %v686_v16 = vmax.f32 %v476_v8, 0.0  ;;  %v718_v17 = vmax.f32 %v604_v9, 0.0 }
 0x149   :  { %v684_v20 = vmax.f32 %v468_v12, 0.0  ;;  %v716_v21 = vmax.f32 %v596_v13, 0.0 }
 0x14a   :  { %v1280_v22 = vpack.c.bf16 %v686_v16, %v685_v14  ;;  %v1360_v23 = vpack.c.bf16 %v718_v17, %v717_v15 }
 0x14b   :  { %v1275_v24 = vpack.c.bf16 %v684_v20, %v683_v18  ;;  %v1355_v25 = vpack.c.bf16 %v716_v21, %v715_v19  ;;  %v1507_v26 = vpop.f32.mrb[16].mxu0  ;;  %v1539_v27 = vpop.f32.mrb[16].mxu1 }
 0x14c   :  { %1408 = vst [vmem:[#allocation8 + $0x38] sm:$0xff] %v1280_v22   ;;  %1424 = vst [vmem:[#allocation8 + $0xb8] sm:$0xff] %v1360_v23   ;;  %v489_v28 = vadd.f32 %v1507_v26, %v1784_v40  ;;  %v617_v29 = vadd.f32 %v1539_v27, %v1784_v40  ;;  %v480_v30 = vpop.f32.mrb[17].mxu0  ;;  %v608_v31 = vpop.f32.mrb[17].mxu1 }
 0x14d   :  { %1407 = vst [vmem:[#allocation8 + $0x30] sm:$0xff] %v1275_v24   ;;  %1423 = vst [vmem:[#allocation8 + $0xb0] sm:$0xff] %v1355_v25   ;;  %v481_v32 = vadd.f32 %v1784_v40, %v480_v30  ;;  %v609_v33 = vadd.f32 %v1784_v40, %v608_v31  ;;  %v1508_v34 = vpop.f32.mrb[18].mxu0  ;;  %v1540_v35 = vpop.f32.mrb[18].mxu1 }
 0x14e   :  { %v492_v36 = vadd.f32 %v1508_v34, %v1784_v40  ;;  %v620_v37 = vadd.f32 %v1540_v35, %v1784_v40  ;;  %v483_v38 = vpop.f32.mrb[19].mxu0  ;;  %v611_v39 = vpop.f32.mrb[19].mxu1  ;;  %v689_v43 = vmax.f32 %v489_v28, 0.0  ;;  %v721_v44 = vmax.f32 %v617_v29, 0.0 }
 0x14f   :  { %v484_v41 = vadd.f32 %v1784_v40, %v483_v38  ;;  %v612_v42 = vadd.f32 %v1784_v40, %v611_v39  ;;  %v687_v47 = vmax.f32 %v481_v32, 0.0  ;;  %v719_v48 = vmax.f32 %v609_v33, 0.0 }
 0x150   :  { %v690_v45 = vmax.f32 %v492_v36, 0.0  ;;  %v722_v46 = vmax.f32 %v620_v37, 0.0 }
 0x151   :  { %v688_v49 = vmax.f32 %v484_v41, 0.0  ;;  %v720_v50 = vmax.f32 %v612_v42, 0.0 }
 0x152   :  { %v1290_v51 = vpack.c.bf16 %v690_v45, %v689_v43  ;;  %v1370_v52 = vpack.c.bf16 %v722_v46, %v721_v44 }
 0x153   :  { %v1285_v53 = vpack.c.bf16 %v688_v49, %v687_v47  ;;  %v1365_v54 = vpack.c.bf16 %v720_v50, %v719_v48  ;;  %v1511_v55 = vpop.f32.mrb[20].mxu0  ;;  %v1543_v56 = vpop.f32.mrb[20].mxu1 }
 0x154   :  { %1410 = vst [vmem:[#allocation8 + $0x48] sm:$0xff] %v1290_v51   ;;  %1426 = vst [vmem:[#allocation8 + $0xc8] sm:$0xff] %v1370_v52   ;;  %v505_v57 = vadd.f32 %v1511_v55, %v1784_v40  ;;  %v633_v58 = vadd.f32 %v1543_v56, %v1784_v40  ;;  %v496_v59 = vpop.f32.mrb[21].mxu0  ;;  %v624_v60 = vpop.f32.mrb[21].mxu1 }
 0x155   :  { %1409 = vst [vmem:[#allocation8 + $0x40] sm:$0xff] %v1285_v53   ;;  %1425 = vst [vmem:[#allocation8 + $0xc0] sm:$0xff] %v1365_v54   ;;  %v497_v61 = vadd.f32 %v1784_v40, %v496_v59  ;;  %v625_v62 = vadd.f32 %v1784_v40, %v624_v60  ;;  %v1512_v63 = vpop.f32.mrb[22].mxu0  ;;  %v1544_v0 = vpop.f32.mrb[22].mxu1 }
 0x156   :  { %v508_v1 = vadd.f32 %v1512_v63, %v1784_v40  ;;  %v636_v2 = vadd.f32 %v1544_v0, %v1784_v40  ;;  %v499_v3 = vpop.f32.mrb[23].mxu0  ;;  %v627_v4 = vpop.f32.mrb[23].mxu1  ;;  %v693_v7 = vmax.f32 %v505_v57, 0.0  ;;  %v725_v8 = vmax.f32 %v633_v58, 0.0 }
 0x157   :  { %v500_v5 = vadd.f32 %v1784_v40, %v499_v3  ;;  %v628_v6 = vadd.f32 %v1784_v40, %v627_v4  ;;  %v691_v11 = vmax.f32 %v497_v61, 0.0  ;;  %v723_v12 = vmax.f32 %v625_v62, 0.0 }
 0x158   :  { %v694_v9 = vmax.f32 %v508_v1, 0.0  ;;  %v726_v10 = vmax.f32 %v636_v2, 0.0 }
 0x159   :  { %v692_v13 = vmax.f32 %v500_v5, 0.0  ;;  %v724_v14 = vmax.f32 %v628_v6, 0.0 }
 0x15a   :  { %v1300_v15 = vpack.c.bf16 %v694_v9, %v693_v7  ;;  %v1380_v16 = vpack.c.bf16 %v726_v10, %v725_v8 }
 0x15b   :  { %v1295_v17 = vpack.c.bf16 %v692_v13, %v691_v11  ;;  %v1375_v18 = vpack.c.bf16 %v724_v14, %v723_v12  ;;  %v1515_v19 = vpop.f32.mrb[24].mxu0  ;;  %v1547_v20 = vpop.f32.mrb[24].mxu1 }
 0x15c   :  { %1412 = vst [vmem:[#allocation8 + $0x58] sm:$0xff] %v1300_v15   ;;  %1428 = vst [vmem:[#allocation8 + $0xd8] sm:$0xff] %v1380_v16   ;;  %v521_v21 = vadd.f32 %v1515_v19, %v1784_v40  ;;  %v649_v22 = vadd.f32 %v1547_v20, %v1784_v40  ;;  %v512_v23 = vpop.f32.mrb[25].mxu0  ;;  %v640_v24 = vpop.f32.mrb[25].mxu1 }
 0x15d   :  { %1411 = vst [vmem:[#allocation8 + $0x50] sm:$0xff] %v1295_v17   ;;  %1427 = vst [vmem:[#allocation8 + $0xd0] sm:$0xff] %v1375_v18   ;;  %v513_v25 = vadd.f32 %v1784_v40, %v512_v23  ;;  %v641_v26 = vadd.f32 %v1784_v40, %v640_v24  ;;  %v1516_v27 = vpop.f32.mrb[26].mxu0  ;;  %v1548_v28 = vpop.f32.mrb[26].mxu1 }
 0x15e   :  { %v524_v29 = vadd.f32 %v1516_v27, %v1784_v40  ;;  %v652_v30 = vadd.f32 %v1548_v28, %v1784_v40  ;;  %v515_v31 = vpop.f32.mrb[27].mxu0  ;;  %v643_v32 = vpop.f32.mrb[27].mxu1  ;;  %v697_v35 = vmax.f32 %v521_v21, 0.0  ;;  %v729_v36 = vmax.f32 %v649_v22, 0.0 }
 0x15f   :  { %v516_v33 = vadd.f32 %v1784_v40, %v515_v31  ;;  %v644_v34 = vadd.f32 %v1784_v40, %v643_v32  ;;  %v695_v39 = vmax.f32 %v513_v25, 0.0  ;;  %v727_v41 = vmax.f32 %v641_v26, 0.0 }
 0x160   :  { %v698_v37 = vmax.f32 %v524_v29, 0.0  ;;  %v730_v38 = vmax.f32 %v652_v30, 0.0 }
 0x161   :  { %v696_v42 = vmax.f32 %v516_v33, 0.0  ;;  %v728_v43 = vmax.f32 %v644_v34, 0.0 }
 0x162   :  { %v1310_v44 = vpack.c.bf16 %v698_v37, %v697_v35  ;;  %v1390_v45 = vpack.c.bf16 %v730_v38, %v729_v36 }
 0x163   :  { %v1305_v46 = vpack.c.bf16 %v696_v42, %v695_v39  ;;  %v1385_v47 = vpack.c.bf16 %v728_v43, %v727_v41  ;;  %v1519_v48 = vpop.f32.mrb[28].mxu0  ;;  %v1551_v49 = vpop.f32.mrb[28].mxu1 }
 0x164   :  { %1414 = vst [vmem:[#allocation8 + $0x68] sm:$0xff] %v1310_v44   ;;  %1430 = vst [vmem:[#allocation8 + $0xe8] sm:$0xff] %v1390_v45   ;;  %v537_v50 = vadd.f32 %v1519_v48, %v1784_v40  ;;  %v665_v51 = vadd.f32 %v1551_v49, %v1784_v40  ;;  %v528_v52 = vpop.f32.mrb[29].mxu0  ;;  %v656_v53 = vpop.f32.mrb[29].mxu1 }
 0x165   :  { %1413 = vst [vmem:[#allocation8 + $0x60] sm:$0xff] %v1305_v46   ;;  %1429 = vst [vmem:[#allocation8 + $0xe0] sm:$0xff] %v1385_v47   ;;  %v529_v54 = vadd.f32 %v1784_v40, %v528_v52  ;;  %v657_v55 = vadd.f32 %v1784_v40, %v656_v53  ;;  %v1520_v56 = vpop.f32.mrb[30].mxu0  ;;  %v1552_v57 = vpop.f32.mrb[30].mxu1 }
 0x166   :  { %v540_v58 = vadd.f32 %v1520_v56, %v1784_v40  ;;  %v668_v59 = vadd.f32 %v1552_v57, %v1784_v40  ;;  %v531_v60 = vpop.f32.mrb[31].mxu0  ;;  %v659_v61 = vpop.f32.mrb[31].mxu1  ;;  %v701_v0 = vmax.f32 %v537_v50, 0.0  ;;  %v733_v1 = vmax.f32 %v665_v51, 0.0 }
 0x167   :  { %v532_v62 = vadd.f32 %v1784_v40, %v531_v60  ;;  %v660_v63 = vadd.f32 %v1784_v40, %v659_v61  ;;  %v699_v4 = vmax.f32 %v529_v54, 0.0  ;;  %v731_v5 = vmax.f32 %v657_v55, 0.0 }
 0x168   :  { %v702_v2 = vmax.f32 %v540_v58, 0.0  ;;  %v734_v3 = vmax.f32 %v668_v59, 0.0 }
 0x169   :  { %v700_v6 = vmax.f32 %v532_v62, 0.0  ;;  %v732_v7 = vmax.f32 %v660_v63, 0.0 }
 0x16a   :  { %v1320_v8 = vpack.c.bf16 %v702_v2, %v701_v0  ;;  %v1400_v9 = vpack.c.bf16 %v734_v3, %v733_v1 }
 0x16b   :  { %v1315_v10 = vpack.c.bf16 %v700_v6, %v699_v4  ;;  %v1395_v11 = vpack.c.bf16 %v732_v7, %v731_v5 }
 0x16c   :  { %1416 = vst [vmem:[#allocation8 + $0x78] sm:$0xff] %v1320_v8   ;;  %1432 = vst [vmem:[#allocation8 + $0xf8] sm:$0xff] %v1400_v9  }
 0x16d   :  { %1415 = vst [vmem:[#allocation8 + $0x70] sm:$0xff] %v1315_v10   ;;  %1431 = vst [vmem:[#allocation8 + $0xf0] sm:$0xff] %v1395_v11  }
 0x16e   :  { %1692 = shalt.err (!%p1689_p0)
}
 0x16f   :  { %s1693_s28 = scalar_lea.hbm %s1868_s3, 4096 }
 0x170   :  { %p1694_p1 = scmp.ne.s32.totalorder %s1868_s3, %s1693_s28  ;;  %p1697_p2 = scmp.lt.u32.totalorder %s1693_s28, %s1868_s3 }
 0x172   :  { %p1699_p3 = pnand %p1697_p2, %p1694_p1 }
 0x174   :  { %1702 = shalt.err (!%p1699_p3)
}
 0x175   :  { %1066 = dma.vmem_to_hbm [thread:$0]  %s1061_s22, 4096, %s1868_s3, [#allocation4], %s1711_s24, %s1711_s24, %s1712_s25  }
 0x176   :  { %1707 = dma.done.wait [#allocation4], 4096  }
 0x177   :  { %1708 = vsyncadd [#allocation4], 4294963200 }
 0x178   :  { %1070 = vsyncpa [#allocation3], 1 }
 0x179   :  { %1071 = vsyncpa [#allocation6], 1 }
 0x17a   :  { %1072 = vsyncpa [#allocation4], 1 }

// kernel: bottleneck_forward.3
= control target key start
LH: loop header
LB: loop body
LE: loop exit
PB: predicated region body
PF: predicated region fallthrough
CT: control target
= control target key end

     0   :  { %12 = vsyncpa [#allocation3], 0  ;;  %s3417_s0 = inlined_call_operand.hbm [shape: bf16[128,1152], index: 0, kind: input, shape index: {}]   ;;  %s3418_s1 = inlined_call_operand.hbm [shape: bf16[1152,128], index: 1, kind: input, shape index: {}]   ;;  %s3419_s2 = inlined_call_operand.hbm [shape: f32[1,128], index: 2, kind: input, shape index: {}]   ;;  %s3420_s3 = inlined_call_operand.hbm [shape: bf16[128,128], index: 3, kind: input, shape index: {}]   ;;  %s3421_s4 = inlined_call_operand.hbm [shape: bf16[128,128], index: 4, kind: input, shape index: {}]   ;;  %s3422_s5 = inlined_call_operand.hbm [shape: bf16[128,128], index: 5, kind: input, shape index: {}]   ;;  %s3423_s6 = inlined_call_operand.hbm [shape: f32[1,128], index: 6, kind: input, shape index: {}]   ;;  %s3424_s7 = inlined_call_operand.hbm [shape: f32[128,128], index: 7, kind: output, shape index: {}]  }
   0x1   :  { %13 = vsyncpa [#allocation6], 0 }
   0x2   :  { %14 = vsyncpa [#allocation9], 0 }
   0x3   :  { %15 = vsyncpa [#allocation12], 0 }
   0x4   :  { %16 = vsyncpa [#allocation4], 0  ;;  %s3122_s24 = smov [#allocation5]   ;;  %s2936_s28 = scalar_lea.hbm %s3418_s1, 9216 }
   0x5   :  { %s34_s25 = sshll.u32 %s3122_s24, 4  ;;  %p2937_p0 = scmp.ne.s32.totalorder %s3418_s1, %s2936_s28  ;;  %s35_s25 = int_to_ptr.vmem [resolvable:$true] %s34_s25 }
   0x6   :  { %p2940_p1 = scmp.lt.u32.totalorder %s2936_s28, %s3418_s1 }
   0x8   :  { %p2942_p2 = pnand %p2940_p1, %p2937_p0 }
   0xa   :  { %2945 = shalt.err (!%p2942_p2)
}
   0xb   :  { %s2946_s10 = scalar_lea.vmem %s35_s25, 9216  ;;  %p2951_p4 = scmp.lt.s32.totalorder %s35_s25, %s35_s25 }
   0xc   :  { %p2947_p3 = scmp.ne.s32.totalorder %s35_s25, %s2946_s10  ;;  %p2952_p5 = scmp.lt.s32.totalorder %s2946_s10, %s2946_s10 }
   0xe   :  { %p2953_p6 = por %p2952_p5, %p2951_p4 }
  0x10   :  { %p2954_p7 = pnand %p2953_p6, %p2947_p3 }
  0x12   :  { %2957 = shalt.err (!%p2954_p7)
}
  0x13   :  { %s3123_s11 = smov 64   ;;  %s3124_s12 = smov 4  }
  0x14   :  { %40 = dma.hbm_to_vmem [thread:$0]  %s3418_s1, 9216, %s35_s25, [#allocation6], %s3123_s11, %s3123_s11, %s3124_s12  }
  0x15   :  { %s3125_s15 = smov [#allocation8]   ;;  %s3126_s17 = smov [#allocation11]  }
  0x16   :  { %s56_s16 = sshll.u32 %s3125_s15, 4  ;;  %s80_s18 = sshll.u32 %s3126_s17, 4  ;;  %s57_s16 = int_to_ptr.vmem [resolvable:$true] %s56_s16  ;;  %s81_s18 = int_to_ptr.vmem [resolvable:$true] %s80_s18 }
  0x17   :  { %s2958_s21 = scalar_lea.hbm %s3420_s3, 1024 }
  0x18   :  { %p2959_p8 = scmp.ne.s32.totalorder %s3420_s3, %s2958_s21  ;;  %p2962_p9 = scmp.lt.u32.totalorder %s2958_s21, %s3420_s3 }
  0x1a   :  { %p2964_p10 = pnand %p2962_p9, %p2959_p8 }
  0x1c   :  { %2967 = shalt.err (!%p2964_p10)
}
  0x1d   :  { %s2968_s1 = scalar_lea.vmem %s57_s16, 1024  ;;  %p2973_p12 = scmp.lt.s32.totalorder %s57_s16, %s57_s16 }
  0x1e   :  { %p2969_p11 = scmp.ne.s32.totalorder %s57_s16, %s2968_s1  ;;  %p2974_p13 = scmp.lt.s32.totalorder %s2968_s1, %s2968_s1 }
  0x20   :  { %p2975_p0 = por %p2974_p13, %p2973_p12 }
  0x22   :  { %p2976_p1 = pnand %p2975_p0, %p2969_p11 }
  0x24   :  { %2979 = shalt.err (!%p2976_p1)
}
  0x25   :  { %62 = dma.hbm_to_vmem [thread:$0]  %s3420_s3, 1024, %s57_s16, [#allocation9], %s3123_s11, %s3123_s11, %s3124_s12  }
  0x26   :  { %s2980_s30 = scalar_lea.hbm %s3422_s5, 1024 }
  0x27   :  { %p2981_p2 = scmp.ne.s32.totalorder %s3422_s5, %s2980_s30  ;;  %p2984_p3 = scmp.lt.u32.totalorder %s2980_s30, %s3422_s5 }
  0x29   :  { %p2986_p4 = pnand %p2984_p3, %p2981_p2 }
  0x2b   :  { %2989 = shalt.err (!%p2986_p4)
}
  0x2c   :  { %s2990_s14 = scalar_lea.vmem %s81_s18, 1024  ;;  %p2995_p6 = scmp.lt.s32.totalorder %s81_s18, %s81_s18 }
  0x2d   :  { %p2991_p5 = scmp.ne.s32.totalorder %s81_s18, %s2990_s14  ;;  %p2996_p7 = scmp.lt.s32.totalorder %s2990_s14, %s2990_s14 }
  0x2f   :  { %p2997_p8 = por %p2996_p7, %p2995_p6 }
  0x31   :  { %p2998_p9 = pnand %p2997_p8, %p2991_p5 }
  0x33   :  { %3001 = shalt.err (!%p2998_p9)
}
  0x34   :  { %86 = dma.hbm_to_vmem [thread:$0]  %s3422_s5, 1024, %s81_s18, [#allocation12], %s3123_s11, %s3123_s11, %s3124_s12  }
  0x35   :  { %s3127_s16 = smov [#allocation2]   ;;  %s3002_s21 = scalar_lea.hbm %s3417_s0, 9216 }
  0x36   :  { %s22_s17 = sshll.u32 %s3127_s16, 4  ;;  %p3003_p10 = scmp.ne.s32.totalorder %s3417_s0, %s3002_s21  ;;  %s23_s17 = int_to_ptr.vmem [resolvable:$true] %s22_s17 }
  0x37   :  { %p3006_p11 = scmp.lt.u32.totalorder %s3002_s21, %s3417_s0 }
  0x39   :  { %p3008_p12 = pnand %p3006_p11, %p3003_p10 }
  0x3b   :  { %3011 = shalt.err (!%p3008_p12)
}
  0x3c   :  { %s3012_s1 = scalar_lea.vmem %s23_s17, 9216  ;;  %p3017_p0 = scmp.lt.s32.totalorder %s23_s17, %s23_s17 }
  0x3d   :  { %p3013_p13 = scmp.ne.s32.totalorder %s23_s17, %s3012_s1  ;;  %p3018_p1 = scmp.lt.s32.totalorder %s3012_s1, %s3012_s1 }
  0x3f   :  { %p3019_p2 = por %p3018_p1, %p3017_p0 }
  0x41   :  { %p3020_p3 = pnand %p3019_p2, %p3013_p13 }
  0x43   :  { %3023 = shalt.err (!%p3020_p3)
}
  0x44   :  { %s3128_s5 = smov 576   ;;  %s3129_s18 = smov 36  }
  0x45   :  { %28 = dma.hbm_to_vmem [thread:$0]  %s3417_s0, 9216, %s23_s17, [#allocation3], %s3128_s5, %s3128_s5, %s3129_s18  }
  0x46   :  { %s3130_s28 = smov [#allocation7]   ;;  %s3131_s30 = smov [#allocation10]  }
  0x47   :  { %s47_s29 = sshll.u32 %s3130_s28, 4  ;;  %s68_s8 = sshll.u32 %s3131_s30, 4  ;;  %s48_s29 = int_to_ptr.vmem [resolvable:$true] %s47_s29  ;;  %s3233_s8 = int_to_ptr.vmem [resolvable:$true] %s68_s8 }
  0x48   :  { %s3024_s13 = scalar_lea.hbm %s3419_s2, 16 }
  0x49   :  { %p3025_p4 = scmp.ne.s32.totalorder %s3419_s2, %s3024_s13  ;;  %p3028_p5 = scmp.lt.u32.totalorder %s3024_s13, %s3419_s2 }
  0x4b   :  { %p3030_p6 = pnand %p3028_p5, %p3025_p4 }
  0x4d   :  { %3033 = shalt.err (!%p3030_p6)
}
  0x4e   :  { %s3034_s0 = scalar_lea.vmem %s48_s29, 16  ;;  %s3038_s17 = scalar_lea.vmem %s48_s29, 32 }
  0x4f   :  { %p3035_p7 = scmp.ne.s32.totalorder %s48_s29, %s3034_s0  ;;  %p3039_p8 = scmp.lt.s32.totalorder %s48_s29, %s48_s29 }
  0x50   :  { %p3040_p9 = scmp.lt.s32.totalorder %s3038_s17, %s3034_s0 }
  0x52   :  { %p3041_p10 = por %p3040_p9, %p3039_p8 }
  0x54   :  { %p3042_p11 = pnand %p3041_p10, %p3035_p7 }
  0x56   :  { %3045 = shalt.err (!%p3042_p11)
}
  0x57   :  { %50 = dma.hbm_to_vmem [thread:$0]  %s3419_s2, 16, %s48_s29, [#allocation6]  }
  0x58   :  { %s3046_s23 = scalar_lea.hbm %s3421_s4, 1024 }
  0x59   :  { %p3047_p12 = scmp.ne.s32.totalorder %s3421_s4, %s3046_s23  ;;  %p3050_p13 = scmp.lt.u32.totalorder %s3046_s23, %s3421_s4 }
  0x5b   :  { %p3052_p0 = pnand %p3050_p13, %p3047_p12 }
  0x5d   :  { %3055 = shalt.err (!%p3052_p0)
}
  0x5e   :  { %s3056_s18 = scalar_lea.vmem %s3233_s8, 1024  ;;  %p3061_p2 = scmp.lt.s32.totalorder %s3233_s8, %s3233_s8 }
  0x5f   :  { %p3057_p1 = scmp.ne.s32.totalorder %s3233_s8, %s3056_s18  ;;  %p3062_p3 = scmp.lt.s32.totalorder %s3056_s18, %s3056_s18 }
  0x61   :  { %p3063_p4 = por %p3062_p3, %p3061_p2 }
  0x63   :  { %p3064_p5 = pnand %p3063_p4, %p3057_p1 }
  0x65   :  { %3067 = shalt.err (!%p3064_p5)
}
  0x66   :  { %74 = dma.hbm_to_vmem [thread:$0]  %s3421_s4, 1024, %s3233_s8, [#allocation9], %s3123_s11, %s3123_s11, %s3124_s12  }
  0x67   :  { %s3132_s27 = smov [#allocation13]   ;;  %s3068_s9 = scalar_lea.hbm %s3423_s6, 16 }
  0x68   :  { %s93_s28 = sshll.u32 %s3132_s27, 4  ;;  %p3069_p6 = scmp.ne.s32.totalorder %s3423_s6, %s3068_s9  ;;  %s94_s28 = int_to_ptr.vmem [resolvable:$true] %s93_s28 }
  0x69   :  { %p3072_p7 = scmp.lt.u32.totalorder %s3068_s9, %s3423_s6 }
  0x6b   :  { %p3074_p8 = pnand %p3072_p7, %p3069_p6 }
  0x6d   :  { %3077 = shalt.err (!%p3074_p8)
}
  0x6e   :  { %s3078_s15 = scalar_lea.vmem %s94_s28, 16  ;;  %s3082_s4 = scalar_lea.vmem %s94_s28, 32 }
  0x6f   :  { %p3079_p9 = scmp.ne.s32.totalorder %s94_s28, %s3078_s15  ;;  %p3083_p10 = scmp.lt.s32.totalorder %s94_s28, %s94_s28 }
  0x70   :  { %p3084_p11 = scmp.lt.s32.totalorder %s3082_s4, %s3078_s15 }
  0x72   :  { %p3085_p12 = por %p3084_p11, %p3083_p10 }
  0x74   :  { %p3086_p13 = pnand %p3085_p12, %p3079_p9 }
  0x76   :  { %3089 = shalt.err (!%p3086_p13)
}
  0x77   :  { %96 = dma.hbm_to_vmem [thread:$0]  %s3423_s6, 16, %s94_s28, [#allocation12]  }
  0x78   :  { %3112 = dma.done.wait [#allocation3], 9216  }
  0x79   :  { %3113 = vsyncadd [#allocation3], 4294958080 }
  0x7a   :  { %3114 = dma.done.wait [#allocation6], 9232  }
  0x7b   :  { %3115 = vsyncadd [#allocation6], 4294958064 }
  0x7c   :  { %3116 = dma.done.wait [#allocation9], 2048  }
  0x7d   :  { %3117 = vsyncadd [#allocation9], 4294965248 }
  0x7e   :  { %3118 = dma.done.wait [#allocation12], 1040  }
  0x7f   :  { %3119 = vsyncadd [#allocation12], 4294966256  ;;  %v2736_v0 = vld [vmem:[#allocation5 + $0x40] sm:$0xff]   ;;  %v2740_v4 = vld [vmem:[#allocation5 + $0x48] sm:$0xff]   ;;  %s3133_s6 = smov [#allocation14]  }
  0x80   :  { %v2737_v1 = vld [vmem:[#allocation5] sm:$0xff]   ;;  %2290 = vmatprep.subr.bf16.mxu0 %v2736_v0  ;;  %v2741_v5 = vld [vmem:[#allocation5 + $0x8] sm:$0xff]   ;;  %v2744_v8 = vld [vmem:[#allocation5 + $0x50] sm:$0xff]   ;;  %s2105_s8 = sshll.u32 %s3133_s6, 4  ;;  %s2106_s8 = int_to_ptr.vmem [resolvable:$true] %s2105_s8 }
  0x81   :  { %v2738_v2 = vld [vmem:[#allocation5 + $0xc0] sm:$0xff]   ;;  %2291 = vmatpush3.bf16.msra.mxu0 %v2737_v1  ;;  %v2742_v6 = vld [vmem:[#allocation5 + $0xc8] sm:$0xff]   ;;  %v2745_v9 = vld [vmem:[#allocation5 + $0x10] sm:$0xff]   ;;  %s3090_s16 = scalar_lea.vmem %s2106_s8, 2048  ;;  %p3095_p1 = scmp.lt.s32.totalorder %s2106_s8, %s2106_s8 }
  0x82   :  { %v2739_v3 = vld [vmem:[#allocation5 + $0x80] sm:$0xff]   ;;  %2354 = vmatprep.subr.bf16.mxu1 %v2738_v2  ;;  %2292 = vmatprep.subr.bf16.mxu0 %v2740_v4  ;;  %v2743_v7 = vld [vmem:[#allocation5 + $0x88] sm:$0xff]   ;;  %v2746_v10 = vld [vmem:[#allocation5 + $0xd0] sm:$0xff]   ;;  %p3091_p0 = scmp.ne.s32.totalorder %s2106_s8, %s3090_s16  ;;  %p3096_p2 = scmp.lt.s32.totalorder %s3090_s16, %s3090_s16 }
  0x83   :  { %2355 = vmatpush3.bf16.msra.mxu1 %v2739_v3  ;;  %v2747_v11 = vld [vmem:[#allocation5 + $0x90] sm:$0xff]   ;;  %v2748_v12 = vld [vmem:[#allocation5 + $0x58] sm:$0xff]   ;;  %v2752_v16 = vld [vmem:[#allocation5 + $0x60] sm:$0xff]  }
  0x84   :  { %2356 = vmatprep.subr.bf16.mxu1 %v2742_v6  ;;  %v2749_v13 = vld [vmem:[#allocation5 + $0x18] sm:$0xff]   ;;  %v2753_v17 = vld [vmem:[#allocation5 + $0x20] sm:$0xff]   ;;  %v2756_v20 = vld [vmem:[#allocation5 + $0x68] sm:$0xff]   ;;  %p3097_p3 = por %p3096_p2, %p3095_p1 }
  0x85   :  { %2293 = vmatpush3.bf16.msra.mxu0 %v2741_v5  ;;  %v2750_v14 = vld [vmem:[#allocation5 + $0xd8] sm:$0xff]   ;;  %v2754_v18 = vld [vmem:[#allocation5 + $0xe0] sm:$0xff]   ;;  %v2757_v21 = vld [vmem:[#allocation5 + $0x28] sm:$0xff]  }
  0x86   :  { %2294 = vmatprep.subr.bf16.mxu0 %v2744_v8  ;;  %v2751_v15 = vld [vmem:[#allocation5 + $0x98] sm:$0xff]   ;;  %v2755_v19 = vld [vmem:[#allocation5 + $0xa0] sm:$0xff]   ;;  %v2758_v22 = vld [vmem:[#allocation5 + $0xe8] sm:$0xff]   ;;  %p3098_p4 = pnand %p3097_p3, %p3091_p0 }
  0x87   :  { %2357 = vmatpush3.bf16.msra.mxu1 %v2743_v7  ;;  %v2759_v23 = vld [vmem:[#allocation5 + $0xa8] sm:$0xff]   ;;  %v2760_v24 = vld [vmem:[#allocation5 + $0x70] sm:$0xff]   ;;  %v2764_v28 = vld [vmem:[#allocation5 + $0x78] sm:$0xff]  }
  0x88   :  { %2358 = vmatprep.subr.bf16.mxu1 %v2746_v10  ;;  %v2761_v25 = vld [vmem:[#allocation5 + $0x30] sm:$0xff]   ;;  %v2765_v29 = vld [vmem:[#allocation5 + $0x38] sm:$0xff]   ;;  %v2767_v31 = vld [vmem:[#allocation2] ss:$36 sps:$4 sm:$0xff]  }
  0x89   :  { %2295 = vmatpush3.bf16.msra.mxu0 %v2745_v9  ;;  %v2762_v26 = vld [vmem:[#allocation5 + $0xf0] sm:$0xff]   ;;  %v2766_v30 = vld [vmem:[#allocation5 + $0xf8] sm:$0xff]   ;;  %v2769_v32 = vld [vmem:[#allocation2 + $0x4] ss:$36 sps:$4 sm:$0xff]  }
  0x8a   :  { %2296 = vmatprep.subr.bf16.mxu0 %v2748_v12  ;;  %v2763_v27 = vld [vmem:[#allocation5 + $0xb0] sm:$0xff]   ;;  %v2770_v33 = vld [vmem:[#allocation5 + $0xb8] sm:$0xff]   ;;  %1182 = vmatprep.mubr.bf16.mxu0 %v2769_v32  ;;  %v2771_v34 = vld [vmem:[#allocation5 + $0x140] sm:$0xff]  }
  0x8b   :  { %2359 = vmatpush3.bf16.msra.mxu1 %v2747_v11  ;;  %v2772_v35 = vld [vmem:[#allocation2 + $0x8] ss:$36 sps:$4 sm:$0xff]   ;;  %v2775_v37 = vld [vmem:[#allocation5 + $0x100] sm:$0xff]   ;;  %v2780_v41 = vld [vmem:[#allocation2 + $0x54] ss:$36 sps:$4 sm:$0xff]  }
  0x8c   :  { %2360 = vmatprep.subr.bf16.mxu1 %v2750_v14  ;;  %v2774_v36 = vld [vmem:[#allocation2 + $0xc] ss:$36 sps:$4 sm:$0xff]   ;;  %v2784_v44 = vld [vmem:[#allocation2 + $0x94] ss:$36 sps:$4 sm:$0xff]   ;;  %v2788_v46 = vld [vmem:[#allocation2 + $0x9c] ss:$36 sps:$4 sm:$0xff]  }
  0x8d   :  { %2297 = vmatpush3.bf16.msra.mxu0 %v2749_v13  ;;  %1279 = vmatprep.mubr.bf16.mxu1 %v2774_v36  ;;  %v2776_v38 = vld [vmem:[#allocation2 + $0x4c] ss:$36 sps:$4 sm:$0xff]   ;;  %v2792_v49 = vld [vmem:[#allocation2 + $0xdc] ss:$36 sps:$4 sm:$0xff]   ;;  %v2796_v52 = vld [vmem:[#allocation2 + $0xe4] ss:$36 sps:$4 sm:$0xff]  }
  0x8e   :  { %2298 = vmatprep.subr.bf16.mxu0 %v2752_v16  ;;  %v2778_v39 = vld [vmem:[#allocation2 + $0x48] ss:$36 sps:$4 sm:$0xff]   ;;  %v2783_v43 = vld [vmem:[#allocation2 + $0x50] ss:$36 sps:$4 sm:$0xff]   ;;  %v2795_v50 = vld [vmem:[#allocation5 + $0x158] sm:$0xff]  }
  0x8f   :  { %2361 = vmatpush3.bf16.msra.mxu1 %v2751_v15  ;;  %v2779_v40 = vld [vmem:[#allocation5 + $0x148] sm:$0xff]   ;;  %v2787_v45 = vld [vmem:[#allocation5 + $0x150] sm:$0xff]   ;;  %v2791_v51 = vld [vmem:[#allocation2 + $0x98] ss:$36 sps:$4 sm:$0xff]  }
  0x90   :  { %2362 = vmatprep.subr.bf16.mxu1 %v2754_v18  ;;  %v2782_v42 = vld [vmem:[#allocation5 + $0x108] sm:$0xff]   ;;  %v2790_v47 = vld [vmem:[#allocation5 + $0x110] sm:$0xff]   ;;  %v2798_v53 = vld [vmem:[#allocation5 + $0x118] sm:$0xff]  }
  0x91   :  { %2299 = vmatpush3.bf16.msra.mxu0 %v2753_v17  ;;  %v2786_v48 = vld [vmem:[#allocation2 + $0x90] ss:$36 sps:$4 sm:$0xff]   ;;  %v2800_v54 = vld [vmem:[#allocation5 + $0x1c0] sm:$0xff]   ;;  %v2794_v56 = vld [vmem:[#allocation2 + $0xd8] ss:$36 sps:$4 sm:$0xff]  }
  0x92   :  { %2300 = vmatprep.subr.bf16.mxu0 %v2756_v20  ;;  %v2801_v55 = vld [vmem:[#allocation5 + $0x180] sm:$0xff]   ;;  %v2806_v61 = vld [vmem:[#allocation2 + $0x12c] ss:$36 sps:$4 sm:$0xff]   ;;  %v2822_v7 = vld [vmem:[#allocation5 + $0x1d8] sm:$0xff]  }
  0x93   :  { %2363 = vmatpush3.bf16.msra.mxu1 %v2755_v19  ;;  %v2805_v57 = vld [vmem:[#allocation5 + $0x160] sm:$0xff]   ;;  %v2810_v62 = vld [vmem:[#allocation5 + $0x1c8] sm:$0xff]   ;;  %v2820_v5 = vld [vmem:[#allocation5 + $0x1d0] sm:$0xff]  }
  0x94   :  { %2364 = vmatprep.subr.bf16.mxu1 %v2758_v22  ;;  %v2802_v58 = vld [vmem:[#allocation2 + $0x124] ss:$36 sps:$4 sm:$0xff]   ;;  %v2812_v2 = vld [vmem:[#allocation2 + $0x16c] ss:$36 sps:$4 sm:$0xff]   ;;  %v2816_v8 = vld [vmem:[#allocation2 + $0x174] ss:$36 sps:$4 sm:$0xff]  }
  0x95   :  { %2301 = vmatpush3.bf16.msra.mxu0 %v2757_v21  ;;  %v2799_v59 = vld [vmem:[#allocation2 + $0xe0] ss:$36 sps:$4 sm:$0xff]   ;;  %v2811_v63 = vld [vmem:[#allocation5 + $0x188] sm:$0xff]   ;;  %v2821_v6 = vld [vmem:[#allocation5 + $0x190] sm:$0xff]  }
  0x96   :  { %2302 = vmatprep.subr.bf16.mxu0 %v2760_v24  ;;  %v2808_v60 = vld [vmem:[#allocation5 + $0x120] sm:$0xff]   ;;  %v2815_v0 = vld [vmem:[#allocation5 + $0x168] sm:$0xff]   ;;  %v2825_v9 = vld [vmem:[#allocation5 + $0x198] sm:$0xff]  }
  0x97   :  { %2365 = vmatpush3.bf16.msra.mxu1 %v2759_v23  ;;  %v2804_v1 = vld [vmem:[#allocation2 + $0x120] ss:$36 sps:$4 sm:$0xff]   ;;  %v2818_v3 = vld [vmem:[#allocation5 + $0x128] sm:$0xff]   ;;  %v2827_v10 = vld [vmem:[#allocation5 + $0x170] sm:$0xff]  }
  0x98   :  { %2366 = vmatprep.subr.bf16.mxu1 %v2762_v26  ;;  %v2809_v4 = vld [vmem:[#allocation2 + $0x128] ss:$36 sps:$4 sm:$0xff]   ;;  %v2819_v12 = vld [vmem:[#allocation2 + $0x170] ss:$36 sps:$4 sm:$0xff]   ;;  %v2828_v15 = vld [vmem:[#allocation2 + $0x1bc] ss:$36 sps:$4 sm:$0xff]  }
  0x99   :  { %2303 = vmatpush3.bf16.msra.mxu0 %v2761_v25  ;;  %v2814_v11 = vld [vmem:[#allocation2 + $0x168] ss:$36 sps:$4 sm:$0xff]   ;;  %v2823_v13 = vld [vmem:[#allocation2 + $0x1b4] ss:$36 sps:$4 sm:$0xff]   ;;  %v2832_v16 = vld [vmem:[#allocation5 + $0x1e0] sm:$0xff]  }
  0x9a   :  { %2304 = vmatprep.subr.bf16.mxu0 %v2764_v28  ;;  %v2830_v14 = vld [vmem:[#allocation5 + $0x130] sm:$0xff]   ;;  %v2833_v17 = vld [vmem:[#allocation5 + $0x1a0] sm:$0xff]   ;;  %v2834_v18 = vld [vmem:[#allocation5 + $0x1e8] sm:$0xff]  }
  0x9b   :  { %2367 = vmatpush3.bf16.msra.mxu1 %v2763_v27  ;;  %v2826_v19 = vld [vmem:[#allocation2 + $0x1b0] ss:$36 sps:$4 sm:$0xff]   ;;  %v2837_v20 = vld [vmem:[#allocation5 + $0x1a8] sm:$0xff]   ;;  %v2839_v21 = vld [vmem:[#allocation5 + $0x178] sm:$0xff]  }
  0x9c   :  { %2368 = vmatprep.subr.bf16.mxu1 %v2766_v30  ;;  %v2835_v22 = vld [vmem:[#allocation2 + $0x1fc] ss:$36 sps:$4 sm:$0xff]   ;;  %v2840_v25 = vld [vmem:[#allocation2 + $0x204] ss:$36 sps:$4 sm:$0xff]   ;;  %v2844_v26 = vld [vmem:[#allocation5 + $0x1f0] sm:$0xff]  }
  0x9d   :  { %2305 = vmatpush3.bf16.msra.mxu0 %v2765_v29  ;;  %v2831_v23 = vld [vmem:[#allocation2 + $0x1b8] ss:$36 sps:$4 sm:$0xff]   ;;  %v2845_v27 = vld [vmem:[#allocation5 + $0x1b0] sm:$0xff]  }
  0x9e   :  { %2418 = vmatprep.subr.bf16.mxu0 %v2771_v34  ;;  %v2842_v24 = vld [vmem:[#allocation5 + $0x138] sm:$0xff]  }
  0x9f   :  { %2369 = vmatpush3.bf16.msra.mxu1 %v2770_v33  ;;  %v2846_v28 = vld [vmem:[#allocation5 + $0x1f8] sm:$0xff]   ;;  %v2843_v33 = vld [vmem:[#allocation2 + $0x200] ss:$36 sps:$4 sm:$0xff]  }
  0xa0   :  { %1183 = vmatmul.mubr.bf16.vlgmr.msra.gmra.mrb[0].mxu0 %v2767_v31  ;;  %2482 = vmatprep.subr.bf16.mxu1 %v2800_v54  ;;  %v2838_v29 = vld [vmem:[#allocation2 + $0x1f8] ss:$36 sps:$4 sm:$0xff]   ;;  %v2851_v31 = vld [vmem:[#allocation5 + $0x200] sm:$0xff]  }
  0xa1   :  { %2419 = vmatpush3.bf16.msra.mxu0 %v2775_v37  ;;  %1190 = vmatprep.mubr.bf16.mxu0 %v2776_v38  ;;  %v2850_v30 = vld [vmem:[#allocation5 + $0x1b8] sm:$0xff]   ;;  %v2858_v37 = vld [vmem:[#allocation5 + $0x208] sm:$0xff]  }
  0xa2   :  { %1280 = vmatmul.mubr.bf16.vlgmr.msra.gmra.mrb[0].mxu1 %v2772_v35  ;;  %2420 = vmatprep.subr.bf16.mxu0 %v2779_v40  ;;  %v2849_v32 = vld [vmem:[#allocation2 + $0x14] ss:$36 sps:$4 sm:$0xff]   ;;  %v2854_v34 = vld [vmem:[#allocation2 + $0x1c] ss:$36 sps:$4 sm:$0xff]  }
  0xa3   :  { %1287 = vmatprep.mubr.bf16.mxu1 %v2780_v41  ;;  %2483 = vmatpush3.bf16.msra.mxu1 %v2801_v55  ;;  %v2847_v35 = vld [vmem:[#allocation2 + $0x10] ss:$36 sps:$4 sm:$0xff]   ;;  %v2855_v36 = vld [vmem:[#allocation2 + $0x5c] ss:$36 sps:$4 sm:$0xff]  }
  0xa4   :  { %2484 = vmatprep.subr.bf16.mxu1 %v2810_v62  ;;  %v2852_v38 = vld [vmem:[#allocation2 + $0x18] ss:$36 sps:$4 sm:$0xff]   ;;  %v2865_v40 = vld [vmem:[#allocation5 + $0x210] sm:$0xff]  }
  0xa5   :  { %2421 = vmatpush3.bf16.msra.mxu0 %v2782_v42  ;;  %v2857_v41 = vld [vmem:[#allocation2 + $0x58] ss:$36 sps:$4 sm:$0xff]   ;;  %v2862_v42 = vld [vmem:[#allocation2 + $0xa4] ss:$36 sps:$4 sm:$0xff]  }
  0xa6   :  { %2422 = vmatprep.subr.bf16.mxu0 %v2787_v45  ;;  %v2866_v45 = vld [vmem:[#allocation2 + $0xac] ss:$36 sps:$4 sm:$0xff]   ;;  %v2876_v54 = vld [vmem:[#allocation2 + $0x134] ss:$36 sps:$4 sm:$0xff]  }
  0xa7   :  { %2485 = vmatpush3.bf16.msra.mxu1 %v2811_v63  ;;  %v2900_v55 = vld [vmem:[#allocation5 + $0x238] sm:$0xff]   ;;  %v2890_v63 = vld [vmem:[#allocation2 + $0x1c4] ss:$36 sps:$4 sm:$0xff]  }
  0xa8   :  { %1191 = vmatmul.mubr.bf16.gmra.mrb[4].mxu0 %v2778_v39  ;;  %2486 = vmatprep.subr.bf16.mxu1 %v2820_v5  ;;  %v2859_v39 = vld [vmem:[#allocation2 + $0x64] ss:$36 sps:$4 sm:$0xff]   ;;  %v2885_v62 = vld [vmem:[#allocation2 + $0x178] ss:$36 sps:$4 sm:$0xff]  }
  0xa9   :  { %1198 = vmatprep.mubr.bf16.mxu0 %v2784_v44  ;;  %2423 = vmatpush3.bf16.msra.mxu0 %v2790_v47  ;;  %v2861_v44 = vld [vmem:[#allocation2 + $0x60] ss:$36 sps:$4 sm:$0xff]   ;;  %v2901_v5 = vld [vmem:[#allocation2 + $0x214] ss:$36 sps:$4 sm:$0xff]  }
  0xaa   :  { %1288 = vmatmul.mubr.bf16.gmra.mrb[4].mxu1 %v2783_v43  ;;  %2424 = vmatprep.subr.bf16.mxu0 %v2795_v50  ;;  %v2872_v43 = vld [vmem:[#allocation5 + $0x218] sm:$0xff]   ;;  %v2864_v47 = vld [vmem:[#allocation2 + $0xa0] ss:$36 sps:$4 sm:$0xff]   ;;  %v2868_v50 = vld [vmem:[#allocation2 + $0xa8] ss:$36 sps:$4 sm:$0xff]  }
  0xab   :  { %1295 = vmatprep.mubr.bf16.mxu1 %v2788_v46  ;;  %2487 = vmatpush3.bf16.msra.mxu1 %v2821_v6  ;;  %v2879_v46 = vld [vmem:[#allocation5 + $0x220] sm:$0xff]   ;;  %v2899_v6 = vld [vmem:[#allocation2 + $0x208] ss:$36 sps:$4 sm:$0xff]  }
  0xac   :  { %2488 = vmatprep.subr.bf16.mxu1 %v2822_v7  ;;  %v2904_v7 = vld [vmem:[#allocation2 + $0x20] ss:$36 sps:$4 sm:$0xff]  }
  0xad   :  { %2425 = vmatpush3.bf16.msra.mxu0 %v2798_v53  ;;  %v2871_v53 = vld [vmem:[#allocation2 + $0xe8] ss:$36 sps:$4 sm:$0xff]  }
  0xae   :  { %2426 = vmatprep.subr.bf16.mxu0 %v2805_v57  ;;  %v2880_v57 = vld [vmem:[#allocation2 + $0x13c] ss:$36 sps:$4 sm:$0xff]  }
  0xaf   :  { %2489 = vmatpush3.bf16.msra.mxu1 %v2825_v9  ;;  %v2905_v9 = vld [vmem:[#allocation2 + $0x68] ss:$36 sps:$4 sm:$0xff]  }
  0xb0   :  { %1199 = vmatmul.mubr.bf16.gmra.mrb[8].mxu0 %v2786_v48  ;;  %2490 = vmatprep.subr.bf16.mxu1 %v2832_v16  ;;  %v2869_v48 = vld [vmem:[#allocation2 + $0xec] ss:$36 sps:$4 sm:$0xff]   ;;  %v2911_v16 = vld [vmem:[#allocation2 + $0x218] ss:$36 sps:$4 sm:$0xff]  }
  0xb1   :  { %1206 = vmatprep.mubr.bf16.mxu0 %v2792_v49  ;;  %2427 = vmatpush3.bf16.msra.mxu0 %v2808_v60  ;;  %v2886_v49 = vld [vmem:[#allocation5 + $0x228] sm:$0xff]   ;;  %v2882_v60 = vld [vmem:[#allocation2 + $0x138] ss:$36 sps:$4 sm:$0xff]  }
  0xb2   :  { %1296 = vmatmul.mubr.bf16.gmra.mrb[8].mxu1 %v2791_v51  ;;  %2428 = vmatprep.subr.bf16.mxu0 %v2815_v0  ;;  %v2873_v51 = vld [vmem:[#allocation2 + $0xf4] ss:$36 sps:$4 sm:$0xff]   ;;  %v2889_v0 = vld [vmem:[#allocation2 + $0x180] ss:$36 sps:$4 sm:$0xff]  }
  0xb3   :  { %1303 = vmatprep.mubr.bf16.mxu1 %v2796_v52  ;;  %2491 = vmatpush3.bf16.msra.mxu1 %v2833_v17  ;;  %v2893_v52 = vld [vmem:[#allocation5 + $0x230] sm:$0xff]  }
  0xb4   :  { %2492 = vmatprep.subr.bf16.mxu1 %v2834_v18  ;;  %v2913_v17 = vld [vmem:[#allocation11 + $0x8] sm:$0xff]   ;;  %v2914_v18 = vld [vmem:[#allocation11 + $0x10] sm:$0xff]  }
  0xb5   :  { %2429 = vmatpush3.bf16.msra.mxu0 %v2818_v3  ;;  %v2897_v3 = vld [vmem:[#allocation2 + $0x20c] ss:$36 sps:$4 sm:$0xff]  }
  0xb6   :  { %2430 = vmatprep.subr.bf16.mxu0 %v2827_v10  ;;  %v2906_v10 = vld [vmem:[#allocation2 + $0xb0] ss:$36 sps:$4 sm:$0xff]  }
  0xb7   :  { %2493 = vmatpush3.bf16.msra.mxu1 %v2837_v20  ;;  %v2916_v20 = vld [vmem:[#allocation11 + $0x20] sm:$0xff]  }
  0xb8   :  { %1207 = vmatmul.mubr.bf16.gmra.mrb[12].mxu0 %v2794_v56  ;;  %2494 = vmatprep.subr.bf16.mxu1 %v2844_v26  ;;  %v2875_v56 = vld [vmem:[#allocation2 + $0xf0] ss:$36 sps:$4 sm:$0xff]   ;;  %v2921_v26 = vld [vmem:[#allocation11 + $0x38] sm:$0xff]  }
  0xb9   :  { %1214 = vmatprep.mubr.bf16.mxu0 %v2802_v58  ;;  %2431 = vmatpush3.bf16.msra.mxu0 %v2830_v14  ;;  %v2878_v58 = vld [vmem:[#allocation2 + $0x130] ss:$36 sps:$4 sm:$0xff]  }
  0xba   :  { %1304 = vmatmul.mubr.bf16.gmra.mrb[12].mxu1 %v2799_v59  ;;  %2432 = vmatprep.subr.bf16.mxu0 %v2839_v21  ;;  %v2883_v59 = vld [vmem:[#allocation2 + $0x17c] ss:$36 sps:$4 sm:$0xff]   ;;  %v2910_v14 = vld [vmem:[#allocation2 + $0x1d0] ss:$36 sps:$4 sm:$0xff]  }
  0xbb   :  { %1311 = vmatprep.mubr.bf16.mxu1 %v2806_v61  ;;  %2495 = vmatpush3.bf16.msra.mxu1 %v2845_v27  ;;  %v2887_v61 = vld [vmem:[#allocation2 + $0x184] ss:$36 sps:$4 sm:$0xff]   ;;  %v2923_v27 = vld [vmem:[#allocation10 + $0x18] sm:$0xff]  }
  0xbc   :  { %2496 = vmatprep.subr.bf16.mxu1 %v2846_v28  ;;  %v2917_v21 = vld [vmem:[#allocation11 + $0x28] sm:$0xff]   ;;  %v2924_v28 = vld [vmem:[#allocation8] sm:$0xff]  }
  0xbd   :  { %2433 = vmatpush3.bf16.msra.mxu0 %v2842_v24  ;;  %v2920_v24 = vld [vmem:[#allocation10 + $0x8] sm:$0xff]  }
  0xbe   :  { %2594 = vmatprep.subr.bf16.mxu0 %v2851_v31 }
  0xbf   :  { %2497 = vmatpush3.bf16.msra.mxu1 %v2850_v30  ;;  %v2926_v30 = vld [vmem:[#allocation10 + $0x20] sm:$0xff]  }
  0xc0   :  { %1215 = vmatmul.mubr.bf16.gmra.mrb[16].mxu0 %v2804_v1  ;;  %v2894_v1 = vld [vmem:[#allocation2 + $0x1cc] ss:$36 sps:$4 sm:$0xff]  }
  0xc1   :  { %1222 = vmatprep.mubr.bf16.mxu0 %v2812_v2  ;;  %v2892_v2 = vld [vmem:[#allocation2 + $0x1c0] ss:$36 sps:$4 sm:$0xff]  }
  0xc2   :  { %1312 = vmatmul.mubr.bf16.gmra.mrb[16].mxu1 %v2809_v4  ;;  %v2896_v4 = vld [vmem:[#allocation2 + $0x1c8] ss:$36 sps:$4 sm:$0xff]  }
  0xc3   :  { %1319 = vmatprep.mubr.bf16.mxu1 %v2816_v8  ;;  %v2903_v8 = vld [vmem:[#allocation2 + $0x210] ss:$36 sps:$4 sm:$0xff]  }
  0xc8   :  { %1223 = vmatmul.mubr.bf16.gmra.mrb[20].mxu0 %v2814_v11  ;;  %v2907_v11 = vld [vmem:[#allocation2 + $0xf8] ss:$36 sps:$4 sm:$0xff]  }
  0xc9   :  { %1230 = vmatprep.mubr.bf16.mxu0 %v2823_v13  ;;  %v2909_v13 = vld [vmem:[#allocation2 + $0x188] ss:$36 sps:$4 sm:$0xff]  }
  0xca   :  { %1320 = vmatmul.mubr.bf16.gmra.mrb[20].mxu1 %v2819_v12  ;;  %v2908_v12 = vld [vmem:[#allocation2 + $0x140] ss:$36 sps:$4 sm:$0xff]  }
  0xcb   :  { %1327 = vmatprep.mubr.bf16.mxu1 %v2828_v15  ;;  %v2912_v15 = vld [vmem:[#allocation11] sm:$0xff]  }
  0xcc   :  { %2626 = vmatprep.subr.bf16.mxu1 %v2912_v15 }
  0xd0   :  { %1231 = vmatmul.mubr.bf16.gmra.mrb[24].mxu0 %v2826_v19  ;;  %v2915_v19 = vld [vmem:[#allocation11 + $0x18] sm:$0xff]  }
  0xd1   :  { %1238 = vmatprep.mubr.bf16.mxu0 %v2835_v22  ;;  %v2919_v22 = vld [vmem:[#allocation10] sm:$0xff]  }
  0xd2   :  { %1328 = vmatmul.mubr.bf16.gmra.mrb[24].mxu1 %v2831_v23  ;;  %v2918_v23 = vld [vmem:[#allocation11 + $0x30] sm:$0xff]  }
  0xd3   :  { %1335 = vmatprep.mubr.bf16.mxu1 %v2840_v25  ;;  %v2922_v25 = vld [vmem:[#allocation10 + $0x10] sm:$0xff]  }
  0xd8   :  { %1239 = vmatmul.mubr.bf16.gmra.mrb[28].mxu0 %v2838_v29  ;;  %v2925_v29 = vld [vmem:[#allocation8 + $0x8] sm:$0xff]  }
  0xd9   :  { %1376 = vmatprep.mubr.bf16.mxu0 %v2849_v32  ;;  %v2928_v32 = vld [vmem:[#allocation8 + $0x10] sm:$0xff]  }
  0xda   :  { %1336 = vmatmul.mubr.bf16.gmra.mrb[28].mxu1 %v2843_v33  ;;  %v2929_v33 = vld [vmem:[#allocation8 + $0x18] sm:$0xff]  }
  0xdb   :  { %1473 = vmatprep.mubr.bf16.mxu1 %v2854_v34 }
  0xe0   :  { %1377 = vmatmul.mubr.bf16.vlgmr.msra.gmra.mrb[32].mxu0 %v2847_v35  ;;  %v3279_v35 = vld [vmem:[#allocation7] ss:$0 sm:$0xff] }
  0xe1   :  { %2595 = vmatpush3.bf16.msra.mxu0 %v2851_v31  ;;  %1384 = vmatprep.mubr.bf16.mxu0 %v2855_v36  ;;  %v2927_v31 = vld [vmem:[#allocation10 + $0x28] sm:$0xff]  }
  0xe2   :  { %2596 = vmatprep.subr.bf16.mxu0 %v2858_v37  ;;  %1474 = vmatmul.mubr.bf16.vlgmr.msra.gmra.mrb[32].mxu1 %v2852_v38 }
  0xe3   :  { %1481 = vmatprep.mubr.bf16.mxu1 %v2859_v39  ;;  %2627 = vmatpush3.bf16.msra.mxu1 %v2912_v15  ;;  %v2930_v39 = vld [vmem:[#allocation10 + $0x30] sm:$0xff]  }
  0xe4   :  { %2628 = vmatprep.subr.bf16.mxu1 %v2913_v17 }
  0xe5   :  { %2597 = vmatpush3.bf16.msra.mxu0 %v2858_v37 }
  0xe6   :  { %2598 = vmatprep.subr.bf16.mxu0 %v2865_v40 }
  0xe7   :  { %2629 = vmatpush3.bf16.msra.mxu1 %v2913_v17 }
  0xe8   :  { %1385 = vmatmul.mubr.bf16.gmra.mrb[36].mxu0 %v2857_v41  ;;  %2630 = vmatprep.subr.bf16.mxu1 %v2914_v18 }
  0xe9   :  { %1392 = vmatprep.mubr.bf16.mxu0 %v2862_v42  ;;  %2599 = vmatpush3.bf16.msra.mxu0 %v2865_v40 }
  0xea   :  { %2600 = vmatprep.subr.bf16.mxu0 %v2872_v43  ;;  %1482 = vmatmul.mubr.bf16.gmra.mrb[36].mxu1 %v2861_v44 }
  0xeb   :  { %1489 = vmatprep.mubr.bf16.mxu1 %v2866_v45  ;;  %2631 = vmatpush3.bf16.msra.mxu1 %v2914_v18 }
  0xec   :  { %2632 = vmatprep.subr.bf16.mxu1 %v2915_v19 }
  0xed   :  { %2601 = vmatpush3.bf16.msra.mxu0 %v2872_v43 }
  0xee   :  { %2602 = vmatprep.subr.bf16.mxu0 %v2879_v46 }
  0xef   :  { %2633 = vmatpush3.bf16.msra.mxu1 %v2915_v19 }
  0xf0   :  { %1393 = vmatmul.mubr.bf16.gmra.mrb[40].mxu0 %v2864_v47  ;;  %2634 = vmatprep.subr.bf16.mxu1 %v2916_v20 }
  0xf1   :  { %1400 = vmatprep.mubr.bf16.mxu0 %v2869_v48  ;;  %2603 = vmatpush3.bf16.msra.mxu0 %v2879_v46 }
  0xf2   :  { %2604 = vmatprep.subr.bf16.mxu0 %v2886_v49  ;;  %1490 = vmatmul.mubr.bf16.gmra.mrb[40].mxu1 %v2868_v50 }
  0xf3   :  { %1497 = vmatprep.mubr.bf16.mxu1 %v2873_v51  ;;  %2635 = vmatpush3.bf16.msra.mxu1 %v2916_v20 }
  0xf4   :  { %2636 = vmatprep.subr.bf16.mxu1 %v2917_v21 }
  0xf5   :  { %2605 = vmatpush3.bf16.msra.mxu0 %v2886_v49  ;;  %v2931_v49 = vld [vmem:[#allocation10 + $0x38] sm:$0xff]  }
  0xf6   :  { %2606 = vmatprep.subr.bf16.mxu0 %v2893_v52 }
  0xf7   :  { %2637 = vmatpush3.bf16.msra.mxu1 %v2917_v21 }
  0xf8   :  { %1401 = vmatmul.mubr.bf16.gmra.mrb[44].mxu0 %v2871_v53  ;;  %2638 = vmatprep.subr.bf16.mxu1 %v2918_v23 }
  0xf9   :  { %1408 = vmatprep.mubr.bf16.mxu0 %v2876_v54  ;;  %2607 = vmatpush3.bf16.msra.mxu0 %v2893_v52 }
  0xfa   :  { %2608 = vmatprep.subr.bf16.mxu0 %v2900_v55  ;;  %1498 = vmatmul.mubr.bf16.gmra.mrb[44].mxu1 %v2875_v56 }
  0xfb   :  { %1505 = vmatprep.mubr.bf16.mxu1 %v2880_v57  ;;  %2639 = vmatpush3.bf16.msra.mxu1 %v2918_v23 }
  0xfc   :  { %2640 = vmatprep.subr.bf16.mxu1 %v2921_v26 }
  0xfd   :  { %2609 = vmatpush3.bf16.msra.mxu0 %v2900_v55  ;;  %v2932_v55 = vld [vmem:[#allocation8 + $0x20] sm:$0xff]  }
  0xfe   :  { %2658 = vmatprep.subr.bf16.mxu0 %v2919_v22 }
  0xff   :  { %2641 = vmatpush3.bf16.msra.mxu1 %v2921_v26 }
 0x100   :  { %1409 = vmatmul.mubr.bf16.gmra.mrb[48].mxu0 %v2878_v58  ;;  %2690 = vmatprep.subr.bf16.mxu1 %v2919_v22  ;;  %v2933_v58 = vld [vmem:[#allocation8 + $0x28] sm:$0xff]  }
 0x101   :  { %1416 = vmatprep.mubr.bf16.mxu0 %v2883_v59 }
 0x102   :  { %1506 = vmatmul.mubr.bf16.gmra.mrb[48].mxu1 %v2882_v60 }
 0x103   :  { %1513 = vmatprep.mubr.bf16.mxu1 %v2887_v61 }
 0x108   :  { %1417 = vmatmul.mubr.bf16.gmra.mrb[52].mxu0 %v2885_v62 }
 0x109   :  { %1424 = vmatprep.mubr.bf16.mxu0 %v2890_v63 }
 0x10a   :  { %1514 = vmatmul.mubr.bf16.gmra.mrb[52].mxu1 %v2889_v0 }
 0x10b   :  { %1521 = vmatprep.mubr.bf16.mxu1 %v2894_v1 }
 0x110   :  { %1425 = vmatmul.mubr.bf16.gmra.mrb[56].mxu0 %v2892_v2 }
 0x111   :  { %1432 = vmatprep.mubr.bf16.mxu0 %v2897_v3 }
 0x112   :  { %1522 = vmatmul.mubr.bf16.gmra.mrb[56].mxu1 %v2896_v4 }
 0x113   :  { %1529 = vmatprep.mubr.bf16.mxu1 %v2901_v5 }
 0x118   :  { %1433 = vmatmul.mubr.bf16.gmra.mrb[60].mxu0 %v2899_v6 }
 0x119   :  { %2610 = vmatprep.mubr.bf16.mxu0 %v2904_v7 }
 0x11a   :  { %1530 = vmatmul.mubr.bf16.gmra.mrb[60].mxu1 %v2903_v8 }
 0x11b   :  { %2642 = vmatprep.mubr.bf16.mxu1 %v2924_v28 }
 0x120   :  { %2611 = vmatmul.mubr.bf16.vlgmr.msra.gmra.mrb[64].mxu0 %v2905_v9  ;;  %v2934_v9 = vld [vmem:[#allocation8 + $0x30] sm:$0xff]  }
 0x121   :  { %2614 = vmatprep.mubr.bf16.mxu0 %v2906_v10  ;;  %2659 = vmatpush3.bf16.msra.mxu0 %v2919_v22 }
 0x122   :  { %2660 = vmatprep.subr.bf16.mxu0 %v2920_v24  ;;  %2643 = vmatmul.mubr.bf16.vlgmr.msra.gmra.mrb[64].mxu1 %v2925_v29 }
 0x123   :  { %2698 = vmatpush3.bf16.msra.mxu1 %v2919_v22  ;;  %2646 = vmatprep.mubr.bf16.mxu1 %v2928_v32 }
 0x124   :  { %2691 = vmatprep.subr.bf16.mxu1 %v2920_v24 }
 0x125   :  { %2661 = vmatpush3.bf16.msra.mxu0 %v2920_v24 }
 0x126   :  { %2662 = vmatprep.subr.bf16.mxu0 %v2922_v25 }
 0x127   :  { %2699 = vmatpush3.bf16.msra.mxu1 %v2920_v24 }
 0x128   :  { %2615 = vmatmul.mubr.bf16.gmra.mrb[68].mxu0 %v2907_v11  ;;  %2692 = vmatprep.subr.bf16.mxu1 %v2922_v25 }
 0x129   :  { %2618 = vmatprep.mubr.bf16.mxu0 %v2908_v12  ;;  %2663 = vmatpush3.bf16.msra.mxu0 %v2922_v25  ;;  %v2935_v12 = vld [vmem:[#allocation8 + $0x38] sm:$0xff]  }
 0x12a   :  { %2664 = vmatprep.subr.bf16.mxu0 %v2923_v27  ;;  %2647 = vmatmul.mubr.bf16.gmra.mrb[68].mxu1 %v2929_v33 }
 0x12b   :  { %2700 = vmatpush3.bf16.msra.mxu1 %v2922_v25  ;;  %2650 = vmatprep.mubr.bf16.mxu1 %v2932_v55 }
 0x12c   :  { %2693 = vmatprep.subr.bf16.mxu1 %v2923_v27 }
 0x12d   :  { %2665 = vmatpush3.bf16.msra.mxu0 %v2923_v27 }
 0x12e   :  { %2666 = vmatprep.subr.bf16.mxu0 %v2926_v30 }
 0x12f   :  { %2701 = vmatpush3.bf16.msra.mxu1 %v2923_v27 }
 0x130   :  { %2619 = vmatmul.mubr.bf16.gmra.mrb[72].mxu0 %v2909_v13  ;;  %2694 = vmatprep.subr.bf16.mxu1 %v2926_v30 }
 0x131   :  { %2622 = vmatprep.mubr.bf16.mxu0 %v2910_v14  ;;  %2667 = vmatpush3.bf16.msra.mxu0 %v2926_v30 }
 0x132   :  { %2668 = vmatprep.subr.bf16.mxu0 %v2927_v31  ;;  %2651 = vmatmul.mubr.bf16.gmra.mrb[72].mxu1 %v2933_v58 }
 0x133   :  { %2702 = vmatpush3.bf16.msra.mxu1 %v2926_v30  ;;  %2654 = vmatprep.mubr.bf16.mxu1 %v2934_v9 }
 0x134   :  { %2695 = vmatprep.subr.bf16.mxu1 %v2927_v31 }
 0x135   :  { %2669 = vmatpush3.bf16.msra.mxu0 %v2927_v31 }
 0x136   :  { %2670 = vmatprep.subr.bf16.mxu0 %v2930_v39 }
 0x137   :  { %2703 = vmatpush3.bf16.msra.mxu1 %v2927_v31 }
 0x138   :  { %2623 = vmatmul.mubr.bf16.gmra.mrb[76].mxu0 %v2911_v16  ;;  %2696 = vmatprep.subr.bf16.mxu1 %v2930_v39 }
 0x139   :  { %2671 = vmatpush3.bf16.msra.mxu0 %v2930_v39 }
 0x13a   :  { %2672 = vmatprep.subr.bf16.mxu0 %v2931_v49  ;;  %2655 = vmatmul.mubr.bf16.gmra.mrb[76].mxu1 %v2935_v12 }
 0x13b   :  { %2704 = vmatpush3.bf16.msra.mxu1 %v2930_v39 }
 0x13c   :  { %2697 = vmatprep.subr.bf16.mxu1 %v2931_v49 }
 0x13d   :  { %2673 = vmatpush3.bf16.msra.mxu0 %v2931_v49 }
 0x13f   :  { %2705 = vmatpush3.bf16.msra.mxu1 %v2931_v49 }
 0x173   :  { %v2306_v34 = vpop.f32.mrb[0].mxu0 }
 0x174   :  { %v2307_v36 = vpop.f32.mrb[1].mxu0 }
 0x175   :  { %v2308_v37 = vadd.f32 %v2307_v36, %v2306_v34  ;;  %v2309_v38 = vpop.f32.mrb[2].mxu0  ;;  %v2370_v40 = vpop.f32.mrb[0].mxu1 }
 0x176   :  { %v2310_v41 = vpop.f32.mrb[3].mxu0  ;;  %v2371_v44 = vpop.f32.mrb[1].mxu1 }
 0x177   :  { %v1185_v42 = vadd.f32 %v2308_v37, %v3279_v35  ;;  %v2311_v43 = vadd.f32 %v2310_v41, %v2309_v38  ;;  %v2372_v45 = vadd.f32 %v2371_v44, %v2370_v40  ;;  %v2373_v46 = vpop.f32.mrb[2].mxu1 }
 0x178   :  { %v2374_v48 = vpop.f32.mrb[3].mxu1 }
 0x179   :  { %v1188_v47 = vadd.f32 %v2311_v43, %v3279_v35  ;;  %v3283_v50 = vadd.f32 %v2372_v45, %v1185_v42  ;;  %v2375_v51 = vadd.f32 %v2374_v48, %v2373_v46 }
 0x17b   :  { %v2312_v52 = vpop.f32.mrb[4].mxu0  ;;  %v3285_v53 = vadd.f32 %v2375_v51, %v1188_v47 }
 0x17c   :  { %v2313_v54 = vpop.f32.mrb[5].mxu0 }
 0x17d   :  { %v2314_v56 = vadd.f32 %v2313_v54, %v2312_v52  ;;  %v2315_v57 = vpop.f32.mrb[6].mxu0  ;;  %v2376_v59 = vpop.f32.mrb[4].mxu1 }
 0x17e   :  { %v2316_v60 = vpop.f32.mrb[7].mxu0  ;;  %v2377_v63 = vpop.f32.mrb[5].mxu1 }
 0x17f   :  { %v1193_v61 = vadd.f32 %v2314_v56, %v3279_v35  ;;  %v2317_v62 = vadd.f32 %v2316_v60, %v2315_v57  ;;  %v2378_v0 = vadd.f32 %v2377_v63, %v2376_v59  ;;  %v2379_v1 = vpop.f32.mrb[6].mxu1 }
 0x180   :  { %v2380_v3 = vpop.f32.mrb[7].mxu1 }
 0x181   :  { %v1196_v2 = vadd.f32 %v2317_v62, %v3279_v35  ;;  %v3289_v4 = vadd.f32 %v2378_v0, %v1193_v61  ;;  %v2381_v5 = vadd.f32 %v2380_v3, %v2379_v1 }
 0x183   :  { %v2318_v6 = vpop.f32.mrb[8].mxu0  ;;  %v3291_v7 = vadd.f32 %v2381_v5, %v1196_v2 }
 0x184   :  { %v2319_v8 = vpop.f32.mrb[9].mxu0 }
 0x185   :  { %v2320_v10 = vadd.f32 %v2319_v8, %v2318_v6  ;;  %v2321_v11 = vpop.f32.mrb[10].mxu0  ;;  %v2382_v13 = vpop.f32.mrb[8].mxu1 }
 0x186   :  { %v2322_v14 = vpop.f32.mrb[11].mxu0  ;;  %v2383_v17 = vpop.f32.mrb[9].mxu1 }
 0x187   :  { %v1201_v15 = vadd.f32 %v2320_v10, %v3279_v35  ;;  %v2323_v16 = vadd.f32 %v2322_v14, %v2321_v11  ;;  %v2384_v18 = vadd.f32 %v2383_v17, %v2382_v13  ;;  %v2385_v19 = vpop.f32.mrb[10].mxu1 }
 0x188   :  { %v2386_v21 = vpop.f32.mrb[11].mxu1 }
 0x189   :  { %v1204_v20 = vadd.f32 %v2323_v16, %v3279_v35  ;;  %v3295_v22 = vadd.f32 %v2384_v18, %v1201_v15  ;;  %v2387_v23 = vadd.f32 %v2386_v21, %v2385_v19 }
 0x18b   :  { %v2324_v24 = vpop.f32.mrb[12].mxu0  ;;  %v3297_v25 = vadd.f32 %v2387_v23, %v1204_v20 }
 0x18c   :  { %v2325_v26 = vpop.f32.mrb[13].mxu0 }
 0x18d   :  { %v2326_v27 = vadd.f32 %v2325_v26, %v2324_v24  ;;  %v2327_v28 = vpop.f32.mrb[14].mxu0  ;;  %v2388_v29 = vpop.f32.mrb[12].mxu1 }
 0x18e   :  { %v2328_v30 = vpop.f32.mrb[15].mxu0  ;;  %v2389_v33 = vpop.f32.mrb[13].mxu1 }
 0x18f   :  { %v1209_v31 = vadd.f32 %v2326_v27, %v3279_v35  ;;  %v2329_v32 = vadd.f32 %v2328_v30, %v2327_v28  ;;  %v2390_v34 = vadd.f32 %v2389_v33, %v2388_v29  ;;  %v2391_v36 = vpop.f32.mrb[14].mxu1 }
 0x190   :  { %v2392_v38 = vpop.f32.mrb[15].mxu1 }
 0x191   :  { %v1212_v37 = vadd.f32 %v2329_v32, %v3279_v35  ;;  %v3301_v39 = vadd.f32 %v2390_v34, %v1209_v31  ;;  %v2393_v40 = vadd.f32 %v2392_v38, %v2391_v36 }
 0x193   :  { %v2330_v41 = vpop.f32.mrb[16].mxu0  ;;  %v3303_v42 = vadd.f32 %v2393_v40, %v1212_v37 }
 0x194   :  { %v2331_v43 = vpop.f32.mrb[17].mxu0 }
 0x195   :  { %v2332_v44 = vadd.f32 %v2331_v43, %v2330_v41  ;;  %v2333_v45 = vpop.f32.mrb[18].mxu0  ;;  %v2394_v46 = vpop.f32.mrb[16].mxu1 }
 0x196   :  { %v2334_v47 = vpop.f32.mrb[19].mxu0  ;;  %v2395_v51 = vpop.f32.mrb[17].mxu1 }
 0x197   :  { %v1217_v48 = vadd.f32 %v2332_v44, %v3279_v35  ;;  %v2335_v49 = vadd.f32 %v2334_v47, %v2333_v45  ;;  %v2396_v52 = vadd.f32 %v2395_v51, %v2394_v46  ;;  %v2397_v54 = vpop.f32.mrb[18].mxu1 }
 0x198   :  { %v2398_v56 = vpop.f32.mrb[19].mxu1 }
 0x199   :  { %v1220_v55 = vadd.f32 %v2335_v49, %v3279_v35  ;;  %v3307_v57 = vadd.f32 %v2396_v52, %v1217_v48  ;;  %v2399_v58 = vadd.f32 %v2398_v56, %v2397_v54 }
 0x19b   :  { %v2336_v59 = vpop.f32.mrb[20].mxu0  ;;  %v3309_v60 = vadd.f32 %v2399_v58, %v1220_v55 }
 0x19c   :  { %v2337_v61 = vpop.f32.mrb[21].mxu0 }
 0x19d   :  { %v2338_v62 = vadd.f32 %v2337_v61, %v2336_v59  ;;  %v2339_v63 = vpop.f32.mrb[22].mxu0  ;;  %v2400_v0 = vpop.f32.mrb[20].mxu1 }
 0x19e   :  { %v2340_v1 = vpop.f32.mrb[23].mxu0  ;;  %v2401_v5 = vpop.f32.mrb[21].mxu1 }
 0x19f   :  { %v1225_v2 = vadd.f32 %v2338_v62, %v3279_v35  ;;  %v2341_v3 = vadd.f32 %v2340_v1, %v2339_v63  ;;  %v2402_v6 = vadd.f32 %v2401_v5, %v2400_v0  ;;  %v2403_v8 = vpop.f32.mrb[22].mxu1 }
 0x1a0   :  { %v2404_v10 = vpop.f32.mrb[23].mxu1 }
 0x1a1   :  { %v1228_v9 = vadd.f32 %v2341_v3, %v3279_v35  ;;  %v3313_v11 = vadd.f32 %v2402_v6, %v1225_v2  ;;  %v2405_v12 = vadd.f32 %v2404_v10, %v2403_v8 }
 0x1a3   :  { %v2342_v13 = vpop.f32.mrb[24].mxu0  ;;  %v3315_v14 = vadd.f32 %v2405_v12, %v1228_v9 }
 0x1a4   :  { %v2343_v15 = vpop.f32.mrb[25].mxu0 }
 0x1a5   :  { %v2344_v16 = vadd.f32 %v2343_v15, %v2342_v13  ;;  %v2345_v17 = vpop.f32.mrb[26].mxu0  ;;  %v2406_v18 = vpop.f32.mrb[24].mxu1 }
 0x1a6   :  { %v2346_v19 = vpop.f32.mrb[27].mxu0  ;;  %v2407_v23 = vpop.f32.mrb[25].mxu1 }
 0x1a7   :  { %v1233_v20 = vadd.f32 %v2344_v16, %v3279_v35  ;;  %v2347_v21 = vadd.f32 %v2346_v19, %v2345_v17  ;;  %v2408_v24 = vadd.f32 %v2407_v23, %v2406_v18  ;;  %v2409_v26 = vpop.f32.mrb[26].mxu1 }
 0x1a8   :  { %v2410_v28 = vpop.f32.mrb[27].mxu1 }
 0x1a9   :  { %v1236_v27 = vadd.f32 %v2347_v21, %v3279_v35  ;;  %v3319_v29 = vadd.f32 %v2408_v24, %v1233_v20  ;;  %v2411_v30 = vadd.f32 %v2410_v28, %v2409_v26 }
 0x1ab   :  { %v2348_v31 = vpop.f32.mrb[28].mxu0  ;;  %v3321_v32 = vadd.f32 %v2411_v30, %v1236_v27 }
 0x1ac   :  { %v2349_v33 = vpop.f32.mrb[29].mxu0 }
 0x1ad   :  { %v2350_v34 = vadd.f32 %v2349_v33, %v2348_v31  ;;  %v2351_v36 = vpop.f32.mrb[30].mxu0  ;;  %v2412_v37 = vpop.f32.mrb[28].mxu1 }
 0x1ae   :  { %v2352_v38 = vpop.f32.mrb[31].mxu0  ;;  %v2413_v43 = vpop.f32.mrb[29].mxu1 }
 0x1af   :  { %v1241_v40 = vadd.f32 %v2350_v34, %v3279_v35  ;;  %v2353_v41 = vadd.f32 %v2352_v38, %v2351_v36  ;;  %v2414_v44 = vadd.f32 %v2413_v43, %v2412_v37  ;;  %v2415_v45 = vpop.f32.mrb[30].mxu1 }
 0x1b0   :  { %v2416_v47 = vpop.f32.mrb[31].mxu1 }
 0x1b1   :  { %v1244_v46 = vadd.f32 %v2353_v41, %v3279_v35  ;;  %v3325_v48 = vadd.f32 %v2414_v44, %v1241_v40  ;;  %v2417_v49 = vadd.f32 %v2416_v47, %v2415_v45 }
 0x1b3   :  { %v2434_v51 = vpop.f32.mrb[32].mxu0  ;;  %v3327_v52 = vadd.f32 %v2417_v49, %v1244_v46 }
 0x1b4   :  { %v2435_v54 = vpop.f32.mrb[33].mxu0 }
 0x1b5   :  { %v2436_v55 = vadd.f32 %v2435_v54, %v2434_v51  ;;  %v2437_v56 = vpop.f32.mrb[34].mxu0  ;;  %v2498_v58 = vpop.f32.mrb[32].mxu1 }
 0x1b6   :  { %v2438_v59 = vpop.f32.mrb[35].mxu0  ;;  %v2499_v63 = vpop.f32.mrb[33].mxu1 }
 0x1b7   :  { %v1379_v61 = vadd.f32 %v2436_v55, %v3283_v50  ;;  %v2439_v62 = vadd.f32 %v2438_v59, %v2437_v56  ;;  %v2500_v0 = vadd.f32 %v2499_v63, %v2498_v58  ;;  %v2501_v1 = vpop.f32.mrb[34].mxu1 }
 0x1b8   :  { %v2502_v2 = vpop.f32.mrb[35].mxu1 }
 0x1b9   :  { %v1382_v35 = vadd.f32 %v2439_v62, %v3285_v53  ;;  %v2503_v3 = vadd.f32 %v2502_v2, %v2501_v1  ;;  %v3331_v5 = vadd.f32 %v2500_v0, %v1379_v61 }
 0x1bb   :  { %v2440_v6 = vpop.f32.mrb[36].mxu0  ;;  %v3333_v9 = vadd.f32 %v2503_v3, %v1382_v35 }
 0x1bc   :  { %v2441_v8 = vpop.f32.mrb[37].mxu0 }
 0x1bd   :  { %v2442_v10 = vadd.f32 %v2441_v8, %v2440_v6  ;;  %v2443_v12 = vpop.f32.mrb[38].mxu0  ;;  %v2504_v13 = vpop.f32.mrb[36].mxu1 }
 0x1be   :  { %v2444_v15 = vpop.f32.mrb[39].mxu0  ;;  %v2505_v17 = vpop.f32.mrb[37].mxu1 }
 0x1bf   :  { %v1387_v50 = vadd.f32 %v2442_v10, %v3289_v4  ;;  %v2445_v16 = vadd.f32 %v2444_v15, %v2443_v12  ;;  %v2506_v18 = vadd.f32 %v2505_v17, %v2504_v13  ;;  %v2507_v19 = vpop.f32.mrb[38].mxu1 }
 0x1c0   :  { %v2508_v20 = vpop.f32.mrb[39].mxu1 }
 0x1c1   :  { %v1390_v53 = vadd.f32 %v2445_v16, %v3291_v7  ;;  %v2509_v21 = vadd.f32 %v2508_v20, %v2507_v19  ;;  %v3337_v23 = vadd.f32 %v2506_v18, %v1387_v50 }
 0x1c3   :  { %v2446_v24 = vpop.f32.mrb[40].mxu0  ;;  %v3339_v27 = vadd.f32 %v2509_v21, %v1390_v53 }
 0x1c4   :  { %v2447_v26 = vpop.f32.mrb[41].mxu0 }
 0x1c5   :  { %v2448_v28 = vadd.f32 %v2447_v26, %v2446_v24  ;;  %v2449_v30 = vpop.f32.mrb[42].mxu0  ;;  %v2510_v31 = vpop.f32.mrb[40].mxu1 }
 0x1c6   :  { %v2450_v33 = vpop.f32.mrb[43].mxu0  ;;  %v2511_v36 = vpop.f32.mrb[41].mxu1 }
 0x1c7   :  { %v1395_v4 = vadd.f32 %v2448_v28, %v3295_v22  ;;  %v2451_v34 = vadd.f32 %v2450_v33, %v2449_v30  ;;  %v2512_v37 = vadd.f32 %v2511_v36, %v2510_v31  ;;  %v2513_v38 = vpop.f32.mrb[42].mxu1 }
 0x1c8   :  { %v2514_v40 = vpop.f32.mrb[43].mxu1 }
 0x1c9   :  { %v1398_v7 = vadd.f32 %v2451_v34, %v3297_v25  ;;  %v2515_v41 = vadd.f32 %v2514_v40, %v2513_v38  ;;  %v3343_v43 = vadd.f32 %v2512_v37, %v1395_v4 }
 0x1cb   :  { %v2452_v44 = vpop.f32.mrb[44].mxu0  ;;  %v3345_v46 = vadd.f32 %v2515_v41, %v1398_v7 }
 0x1cc   :  { %v2453_v45 = vpop.f32.mrb[45].mxu0 }
 0x1cd   :  { %v2454_v47 = vadd.f32 %v2453_v45, %v2452_v44  ;;  %v2455_v49 = vpop.f32.mrb[46].mxu0  ;;  %v2516_v51 = vpop.f32.mrb[44].mxu1 }
 0x1ce   :  { %v2456_v54 = vpop.f32.mrb[47].mxu0  ;;  %v2517_v56 = vpop.f32.mrb[45].mxu1 }
 0x1cf   :  { %v1403_v22 = vadd.f32 %v2454_v47, %v3301_v39  ;;  %v2457_v55 = vadd.f32 %v2456_v54, %v2455_v49  ;;  %v2518_v58 = vadd.f32 %v2517_v56, %v2516_v51  ;;  %v2519_v59 = vpop.f32.mrb[46].mxu1 }
 0x1d0   :  { %v2520_v61 = vpop.f32.mrb[47].mxu1 }
 0x1d1   :  { %v1406_v25 = vadd.f32 %v2457_v55, %v3303_v42  ;;  %v2521_v62 = vadd.f32 %v2520_v61, %v2519_v59  ;;  %v3349_v63 = vadd.f32 %v2518_v58, %v1403_v22 }
 0x1d3   :  { %v2458_v0 = vpop.f32.mrb[48].mxu0  ;;  %v3351_v35 = vadd.f32 %v2521_v62, %v1406_v25 }
 0x1d4   :  { %v2459_v1 = vpop.f32.mrb[49].mxu0 }
 0x1d5   :  { %v2460_v2 = vadd.f32 %v2459_v1, %v2458_v0  ;;  %v2461_v3 = vpop.f32.mrb[50].mxu0  ;;  %v2522_v6 = vpop.f32.mrb[48].mxu1 }
 0x1d6   :  { %v2462_v8 = vpop.f32.mrb[51].mxu0  ;;  %v2523_v12 = vpop.f32.mrb[49].mxu1 }
 0x1d7   :  { %v1411_v39 = vadd.f32 %v2460_v2, %v3307_v57  ;;  %v2463_v10 = vadd.f32 %v2462_v8, %v2461_v3  ;;  %v2524_v13 = vadd.f32 %v2523_v12, %v2522_v6  ;;  %v2525_v15 = vpop.f32.mrb[50].mxu1 }
 0x1d8   :  { %v2526_v50 = vpop.f32.mrb[51].mxu1 }
 0x1d9   :  { %v1414_v42 = vadd.f32 %v2463_v10, %v3309_v60  ;;  %v2527_v16 = vadd.f32 %v2526_v50, %v2525_v15  ;;  %v3355_v17 = vadd.f32 %v2524_v13, %v1411_v39 }
 0x1db   :  { %v2464_v18 = vpop.f32.mrb[52].mxu0  ;;  %v3357_v53 = vadd.f32 %v2527_v16, %v1414_v42 }
 0x1dc   :  { %v2465_v19 = vpop.f32.mrb[53].mxu0 }
 0x1dd   :  { %v2466_v20 = vadd.f32 %v2465_v19, %v2464_v18  ;;  %v2467_v21 = vpop.f32.mrb[54].mxu0  ;;  %v2528_v24 = vpop.f32.mrb[52].mxu1 }
 0x1de   :  { %v2468_v26 = vpop.f32.mrb[55].mxu0  ;;  %v2529_v30 = vpop.f32.mrb[53].mxu1 }
 0x1df   :  { %v1419_v57 = vadd.f32 %v2466_v20, %v3313_v11  ;;  %v2469_v28 = vadd.f32 %v2468_v26, %v2467_v21  ;;  %v2530_v31 = vadd.f32 %v2529_v30, %v2528_v24  ;;  %v2531_v33 = vpop.f32.mrb[54].mxu1 }
 0x1e0   :  { %v2532_v4 = vpop.f32.mrb[55].mxu1 }
 0x1e1   :  { %v1422_v60 = vadd.f32 %v2469_v28, %v3315_v14  ;;  %v2533_v34 = vadd.f32 %v2532_v4, %v2531_v33  ;;  %v3361_v36 = vadd.f32 %v2530_v31, %v1419_v57 }
 0x1e3   :  { %v2470_v37 = vpop.f32.mrb[56].mxu0  ;;  %v3363_v7 = vadd.f32 %v2533_v34, %v1422_v60 }
 0x1e4   :  { %v2471_v38 = vpop.f32.mrb[57].mxu0 }
 0x1e5   :  { %v2472_v40 = vadd.f32 %v2471_v38, %v2470_v37  ;;  %v2473_v41 = vpop.f32.mrb[58].mxu0  ;;  %v2534_v44 = vpop.f32.mrb[56].mxu1 }
 0x1e6   :  { %v2474_v45 = vpop.f32.mrb[59].mxu0  ;;  %v2535_v49 = vpop.f32.mrb[57].mxu1 }
 0x1e7   :  { %v1427_v11 = vadd.f32 %v2472_v40, %v3319_v29  ;;  %v2475_v47 = vadd.f32 %v2474_v45, %v2473_v41  ;;  %v2536_v51 = vadd.f32 %v2535_v49, %v2534_v44  ;;  %v2537_v54 = vpop.f32.mrb[58].mxu1 }
 0x1e8   :  { %v2538_v22 = vpop.f32.mrb[59].mxu1 }
 0x1e9   :  { %v1430_v14 = vadd.f32 %v2475_v47, %v3321_v32  ;;  %v2539_v55 = vadd.f32 %v2538_v22, %v2537_v54  ;;  %v3367_v56 = vadd.f32 %v2536_v51, %v1427_v11 }
 0x1eb   :  { %v2476_v58 = vpop.f32.mrb[60].mxu0  ;;  %v3369_v25 = vadd.f32 %v2539_v55, %v1430_v14 }
 0x1ec   :  { %v2477_v59 = vpop.f32.mrb[61].mxu0 }
 0x1ed   :  { %v2478_v61 = vadd.f32 %v2477_v59, %v2476_v58  ;;  %v2479_v62 = vpop.f32.mrb[62].mxu0  ;;  %v2540_v0 = vpop.f32.mrb[60].mxu1 }
 0x1ee   :  { %v2480_v1 = vpop.f32.mrb[63].mxu0  ;;  %v2541_v3 = vpop.f32.mrb[61].mxu1 }
 0x1ef   :  { %v1435_v29 = vadd.f32 %v2478_v61, %v3325_v48  ;;  %v2481_v2 = vadd.f32 %v2480_v1, %v2479_v62  ;;  %v2542_v6 = vadd.f32 %v2541_v3, %v2540_v0  ;;  %v2543_v8 = vpop.f32.mrb[62].mxu1 }
 0x1f0   :  { %v2544_v39 = vpop.f32.mrb[63].mxu1 }
 0x1f1   :  { %v1438_v32 = vadd.f32 %v2481_v2, %v3327_v52  ;;  %v2545_v10 = vadd.f32 %v2544_v39, %v2543_v8  ;;  %v1532_v12 = vadd.f32 %v2542_v6, %v1435_v29 }
 0x1f3   :  { %v2612_v13 = vpop.f32.mrb[64].mxu0  ;;  %v1535_v50 = vadd.f32 %v2545_v10, %v1438_v32 }
 0x1f4   :  { %v1581_v15 = vadd.f32 %v2612_v13, %v3337_v23  ;;  %v1572_v42 = vpop.f32.mrb[65].mxu0 }
 0x1f5   :  { %v1573_v16 = vadd.f32 %v1572_v42, %v3331_v5  ;;  %v2613_v18 = vpop.f32.mrb[66].mxu0  ;;  %v2644_v8 = vpop.f32.mrb[64].mxu1 }
 0x1f6   :  { %v1584_v19 = vadd.f32 %v2613_v18, %v3339_v27  ;;  %v1575_v48 = vpop.f32.mrb[67].mxu0  ;;  %v1637_v21 = vmax.f32 %v1581_v15, 0.0  ;;  %v1837_v32 = vpop.f32.mrb[65].mxu1 }
 0x1f7   :  { %v1576_v20 = vadd.f32 %v1575_v48, %v3333_v9  ;;  %v1635_v26 = vmax.f32 %v1573_v16, 0.0  ;;  %v2645_v39 = vpop.f32.mrb[66].mxu1 }
 0x1f8   :  { %v1638_v24 = vmax.f32 %v1584_v19, 0.0  ;;  %v1840_v10 = vpop.f32.mrb[67].mxu1 }
 0x1f9   :  { %v1636_v52 = vmax.f32 %v1576_v20, 0.0 }
 0x1fa   :  { %v1652_v57 = vpack.c.bf16 %v1638_v24, %v1637_v21 }
 0x1fb   :  { %v1651_v28 = vpack.c.bf16 %v1636_v52, %v1635_v26  ;;  %v2616_v30 = vpop.f32.mrb[68].mxu0 }
 0x1fc   :  { %v1597_v31 = vadd.f32 %v2616_v30, %v3349_v63  ;;  %v1588_v23 = vpop.f32.mrb[69].mxu0 }
 0x1fd   :  { %v1589_v33 = vadd.f32 %v1588_v23, %v3343_v43  ;;  %v2617_v60 = vpop.f32.mrb[70].mxu0  ;;  %2674 = vmatprep.mubr.bf16.mxu0 %v1651_v28 }
 0x1fe   :  { %v1600_v5 = vadd.f32 %v2617_v60, %v3351_v35  ;;  %v1591_v27 = vpop.f32.mrb[71].mxu0  ;;  %2675 = vmatmul.mubr.bf16.vlgmr.msra.gmra.mrb[80].mxu0 %v1652_v57  ;;  %v1641_v4 = vmax.f32 %v1597_v31, 0.0 }
 0x1ff   :  { %v1592_v9 = vadd.f32 %v1591_v27, %v3345_v46  ;;  %v1639_v37 = vmax.f32 %v1589_v33, 0.0 }
 0x200   :  { %v1642_v34 = vmax.f32 %v1600_v5, 0.0 }
 0x201   :  { %v1640_v38 = vmax.f32 %v1592_v9, 0.0 }
 0x202   :  { %v1654_v40 = vpack.c.bf16 %v1642_v34, %v1641_v4 }
 0x203   :  { %v1653_v41 = vpack.c.bf16 %v1640_v38, %v1639_v37  ;;  %v2620_v44 = vpop.f32.mrb[72].mxu0 }
 0x204   :  { %v1613_v63 = vadd.f32 %v2620_v44, %v3361_v36  ;;  %v1604_v45 = vpop.f32.mrb[73].mxu0 }
 0x205   :  { %v1605_v43 = vadd.f32 %v1604_v45, %v3355_v17  ;;  %v2621_v11 = vpop.f32.mrb[74].mxu0  ;;  %2678 = vmatprep.mubr.bf16.mxu0 %v1653_v41 }
 0x206   :  { %v1616_v35 = vadd.f32 %v2621_v11, %v3363_v7  ;;  %v1607_v47 = vpop.f32.mrb[75].mxu0  ;;  %2679 = vmatmul.mubr.bf16.gmra.mrb[84].mxu0 %v1654_v40  ;;  %v1645_v49 = vmax.f32 %v1613_v63, 0.0 }
 0x207   :  { %v1608_v46 = vadd.f32 %v1607_v47, %v3357_v53  ;;  %v1643_v54 = vmax.f32 %v1605_v43, 0.0 }
 0x208   :  { %v1646_v51 = vmax.f32 %v1616_v35, 0.0 }
 0x209   :  { %v1644_v14 = vmax.f32 %v1608_v46, 0.0 }
 0x20a   :  { %v1656_v22 = vpack.c.bf16 %v1646_v51, %v1645_v49 }
 0x20b   :  { %v1655_v55 = vpack.c.bf16 %v1644_v14, %v1643_v54  ;;  %v2624_v58 = vpop.f32.mrb[76].mxu0 }
 0x20c   :  { %v1629_v59 = vadd.f32 %v2624_v58, %v1532_v12  ;;  %v1620_v36 = vpop.f32.mrb[77].mxu0 }
 0x20d   :  { %v1621_v61 = vadd.f32 %v1620_v36, %v3367_v56  ;;  %v2625_v17 = vpop.f32.mrb[78].mxu0  ;;  %2682 = vmatprep.mubr.bf16.mxu1 %v1655_v55  ;;  %v2648_v56 = vpop.f32.mrb[68].mxu1 }
 0x20e   :  { %v1632_v62 = vadd.f32 %v2625_v17, %v1535_v50  ;;  %v1623_v0 = vpop.f32.mrb[79].mxu0  ;;  %2683 = vmatmul.mubr.bf16.vlgmr.msra.gmra.mrb[72].mxu1 %v1656_v22  ;;  %v1649_v1 = vmax.f32 %v1629_v59, 0.0  ;;  %v1853_v12 = vpop.f32.mrb[69].mxu1  ;;  %v3387_v50 = vld [vmem:[#allocation13] ss:$0 sm:$0xff] }
 0x20f   :  { %v1624_v7 = vadd.f32 %v1623_v0, %v3369_v25  ;;  %v1647_v29 = vmax.f32 %v1621_v61, 0.0  ;;  %v2649_v13 = vpop.f32.mrb[70].mxu1 }
 0x210   :  { %v1650_v53 = vmax.f32 %v1632_v62, 0.0  ;;  %v1856_v15 = vpop.f32.mrb[71].mxu1 }
 0x211   :  { %v1648_v2 = vmax.f32 %v1624_v7, 0.0 }
 0x212   :  { %v1658_v3 = vpack.c.bf16 %v1650_v53, %v1649_v1 }
 0x213   :  { %v1657_v6 = vpack.c.bf16 %v1648_v2, %v1647_v29 }
 0x215   :  { %2686 = vmatprep.mubr.bf16.mxu1 %v1657_v6 }
 0x216   :  { %2687 = vmatmul.mubr.bf16.gmra.mrb[76].mxu1 %v1658_v3 }
 0x2d1   :  { %v2676_v42 = vpop.f32.mrb[80].mxu0 }
 0x2d2   :  { %v1991_v25 = vadd.f32 %v2676_v42, %v2644_v8  ;;  %v1982_v16 = vpop.f32.mrb[81].mxu0 }
 0x2d3   :  { %v1983_v18 = vadd.f32 %v1982_v16, %v1837_v32  ;;  %v2677_v19 = vpop.f32.mrb[82].mxu0 }
 0x2d4   :  { %v2054_v48 = vadd.f32 %v3387_v50, %v1991_v25  ;;  %v1994_v20 = vadd.f32 %v2677_v19, %v2645_v39  ;;  %v1985_v21 = vpop.f32.mrb[83].mxu0 }
 0x2d5   :  { %v2052_v24 = vadd.f32 %v3387_v50, %v1983_v18  ;;  %v1986_v26 = vadd.f32 %v1985_v21, %v1840_v10 }
 0x2d6   :  { %v2070_v52 = vmax.f32 %v2054_v48, 0.0  ;;  %v2055_v57 = vadd.f32 %v3387_v50, %v1994_v20 }
 0x2d7   :  { %v2068_v28 = vmax.f32 %v2052_v24, 0.0  ;;  %v2053_v30 = vadd.f32 %v3387_v50, %v1986_v26 }
 0x2d8   :  { %2086 = vst [vmem:[#allocation14 + $0x10] sm:$0xff] %v2070_v52  ;;  %v2071_v31 = vmax.f32 %v2055_v57, 0.0 }
 0x2d9   :  { %2084 = vst [vmem:[#allocation14] sm:$0xff] %v2068_v28  ;;  %v2069_v23 = vmax.f32 %v2053_v30, 0.0  ;;  %v2680_v33 = vpop.f32.mrb[84].mxu0 }
 0x2da   :  { %2087 = vst [vmem:[#allocation14 + $0x18] sm:$0xff] %v2071_v31  ;;  %v2007_v60 = vadd.f32 %v2680_v33, %v2648_v56  ;;  %v1998_v5 = vpop.f32.mrb[85].mxu0 }
 0x2db   :  { %2085 = vst [vmem:[#allocation14 + $0x8] sm:$0xff] %v2069_v23  ;;  %v1999_v27 = vadd.f32 %v1998_v5, %v1853_v12  ;;  %v2681_v9 = vpop.f32.mrb[86].mxu0 }
 0x2dc   :  { %v2058_v4 = vadd.f32 %v3387_v50, %v2007_v60  ;;  %v2010_v34 = vadd.f32 %v2681_v9, %v2649_v13  ;;  %v2001_v37 = vpop.f32.mrb[87].mxu0 }
 0x2dd   :  { %v2056_v38 = vadd.f32 %v3387_v50, %v1999_v27  ;;  %v2002_v40 = vadd.f32 %v2001_v37, %v1856_v15 }
 0x2de   :  { %v2074_v41 = vmax.f32 %v2058_v4, 0.0  ;;  %v2059_v44 = vadd.f32 %v3387_v50, %v2010_v34 }
 0x2df   :  { %v2072_v63 = vmax.f32 %v2056_v38, 0.0  ;;  %v2057_v45 = vadd.f32 %v3387_v50, %v2002_v40 }
 0x2e0   :  { %2090 = vst [vmem:[#allocation14 + $0x30] sm:$0xff] %v2074_v41  ;;  %v2075_v43 = vmax.f32 %v2059_v44, 0.0 }
 0x2e1   :  { %2088 = vst [vmem:[#allocation14 + $0x20] sm:$0xff] %v2072_v63  ;;  %v2073_v11 = vmax.f32 %v2057_v45, 0.0  ;;  %v2684_v35 = vpop.f32.mrb[72].mxu1 }
 0x2e2   :  { %2091 = vst [vmem:[#allocation14 + $0x38] sm:$0xff] %v2075_v43  ;;  %v2062_v47 = vadd.f32 %v2684_v35, %v3387_v50  ;;  %v2014_v46 = vpop.f32.mrb[73].mxu1 }
 0x2e3   :  { %2089 = vst [vmem:[#allocation14 + $0x28] sm:$0xff] %v2073_v11  ;;  %v2060_v49 = vadd.f32 %v3387_v50, %v2014_v46  ;;  %v2685_v51 = vpop.f32.mrb[74].mxu1 }
 0x2e4   :  { %v2078_v54 = vmax.f32 %v2062_v47, 0.0  ;;  %v2063_v14 = vadd.f32 %v2685_v51, %v3387_v50  ;;  %v2017_v22 = vpop.f32.mrb[75].mxu1 }
 0x2e5   :  { %v2076_v55 = vmax.f32 %v2060_v49, 0.0  ;;  %v2061_v58 = vadd.f32 %v3387_v50, %v2017_v22 }
 0x2e6   :  { %2094 = vst [vmem:[#allocation14 + $0x50] sm:$0xff] %v2078_v54  ;;  %v2079_v59 = vmax.f32 %v2063_v14, 0.0 }
 0x2e7   :  { %2092 = vst [vmem:[#allocation14 + $0x40] sm:$0xff] %v2076_v55  ;;  %v2077_v36 = vmax.f32 %v2061_v58, 0.0 }
 0x2e8   :  { %2095 = vst [vmem:[#allocation14 + $0x58] sm:$0xff] %v2079_v59 }
 0x2e9   :  { %2093 = vst [vmem:[#allocation14 + $0x48] sm:$0xff] %v2077_v36  ;;  %v2688_v61 = vpop.f32.mrb[76].mxu1 }
 0x2ea   :  { %v2066_v17 = vadd.f32 %v2688_v61, %v3387_v50  ;;  %v2030_v62 = vpop.f32.mrb[77].mxu1 }
 0x2eb   :  { %v2064_v0 = vadd.f32 %v3387_v50, %v2030_v62  ;;  %v2689_v7 = vpop.f32.mrb[78].mxu1 }
 0x2ec   :  { %v2082_v1 = vmax.f32 %v2066_v17, 0.0  ;;  %v2067_v53 = vadd.f32 %v2689_v7, %v3387_v50  ;;  %v2033_v29 = vpop.f32.mrb[79].mxu1 }
 0x2ed   :  { %v2080_v2 = vmax.f32 %v2064_v0, 0.0  ;;  %v2065_v3 = vadd.f32 %v3387_v50, %v2033_v29 }
 0x2ee   :  { %2098 = vst [vmem:[#allocation14 + $0x70] sm:$0xff] %v2082_v1  ;;  %v2083_v6 = vmax.f32 %v2067_v53, 0.0 }
 0x2ef   :  { %2096 = vst [vmem:[#allocation14 + $0x60] sm:$0xff] %v2080_v2  ;;  %v2081_v8 = vmax.f32 %v2065_v3, 0.0 }
 0x2f0   :  { %2099 = vst [vmem:[#allocation14 + $0x78] sm:$0xff] %v2083_v6 }
 0x2f1   :  { %2097 = vst [vmem:[#allocation14 + $0x68] sm:$0xff] %v2081_v8 }
 0x2f2   :  { %3101 = shalt.err (!%p3098_p4)
}
 0x2f3   :  { %s3102_s19 = scalar_lea.hbm %s3424_s7, 2048 }
 0x2f4   :  { %p3103_p5 = scmp.ne.s32.totalorder %s3424_s7, %s3102_s19  ;;  %p3106_p6 = scmp.lt.u32.totalorder %s3102_s19, %s3424_s7 }
 0x2f6   :  { %p3108_p7 = pnand %p3106_p6, %p3103_p5 }
 0x2f8   :  { %3111 = shalt.err (!%p3108_p7)
}
 0x2f9   :  { %s3134_s24 = smov 128   ;;  %s3135_s26 = smov 8  }
 0x2fa   :  { %2111 = dma.vmem_to_hbm [thread:$0]  %s2106_s8, 2048, %s3424_s7, [#allocation4], %s3134_s24, %s3134_s24, %s3135_s26  }
 0x2fb   :  { %3120 = dma.done.wait [#allocation4], 2048  }
 0x2fc   :  { %3121 = vsyncadd [#allocation4], 4294965248 }
 0x2fd   :  { %2115 = vsyncpa [#allocation3], 1 }
 0x2fe   :  { %2116 = vsyncpa [#allocation6], 1 }
 0x2ff   :  { %2117 = vsyncpa [#allocation9], 1 }
 0x300   :  { %2118 = vsyncpa [#allocation12], 1 }
 0x301   :  { %2119 = vsyncpa [#allocation4], 1 }

</bundles_post_ra>
